<compile_context>
chip_gen: v6e
topology: v6e:2x2x1
jax: 0.10.0
libtpu: 0.0.40
codegen_flags: <defaults>
</compile_context>

<pallas_src>
import functools

import jax
import jax.numpy as jnp
from jax.experimental import pallas as pl
from jax.experimental.pallas import tpu as pltpu


def _dwsep_kernel(*refs, K, TH, W):
    # refs = (x_main, x_halo_0 .. x_halo_{K-2}, dww, pww, pwb, out, xcat_scratch)
    n_halo = K - 1
    xm_ref = refs[0]
    halo_refs = refs[1:1 + n_halo]
    dww_ref, pww_ref, pwb_ref, o_ref, xcat_ref = refs[1 + n_halo:]

    # Assemble the (TH+K-1)-row padded input slab for this row tile, kept in
    # the input dtype (no whole-tile f32 cast).
    xcat_ref[0:TH] = xm_ref[...]
    for j, h_ref in enumerate(halo_refs):
        xcat_ref[TH + j:TH + j + 1] = h_ref[...]
    xp = xcat_ref[...]                                    # (TH+K-1, Wp, C)

    dww = dww_ref[...].astype(jnp.float32)                # (K, K, C)
    C = dww.shape[-1]

    # K column(W)-shifted views, built once (W is the sublane dim -> each is a
    # single relayout copy) and reused across kh; kh shifts below are free
    # leading-dim slices.
    xw = [xp[:, kw:kw + W, :] for kw in range(K)]         # each (TH+K-1, W, C)

    acc = jnp.zeros((TH, W, C), jnp.float32)
    for kh in range(K):
        for kw in range(K):
            acc = acc + xw[kw][kh:kh + TH] * dww[kh, kw]  # f32 accumulate

    # Pointwise 1x1 conv on the MXU, contracting C on both operands so the
    # result comes out channels-first: (Cout, TH*W).  The store is lane-dense
    # because TH*W is a multiple of 128 by construction.
    # TODO(synk): for large C/Cout, cast operands to bf16 (keep f32 acc) and/or
    # pad channels toward 128/256 for MXU utilization; tiny C stays latency-bound.
    acc2 = acc.reshape(TH * W, C)                         # free when W % 8 == 0
    out = jax.lax.dot_general(
        pww_ref[...].astype(jnp.float32), acc2,
        dimension_numbers=(((1,), (1,)), ((), ())),
        preferred_element_type=jnp.float32)               # (Cout, TH*W)
    out = out + pwb_ref[...].astype(jnp.float32)          # (Cout, 1) broadcast
    o_ref[...] = out.astype(o_ref.dtype)


def _pick_row_tile(Hout, Wout, target_rows=32):
    """Largest TH <= target_rows with TH | Hout and TH*Wout % 128 == 0.
    Falls back to the whole image (always a legal block)."""
    for th in range(min(target_rows, Hout), 0, -1):
        if Hout % th == 0 and ((th * Wout) % 128 == 0 or th == Hout):
            return th
    return Hout


def depthwise_separable_conv(x_nchw, dw_weight, dw_bias, pw_weight, pw_bias,
                             padding=1, stride=1, row_tile=None):
    """Forward pass of DepthwiseSeparableConv (NCHW in, NCHW out).

    x_nchw    : (N, C, H, W)
    dw_weight : (C, 1, K, K)     depthwise conv weight (groups=C)
    dw_bias   : (C,)
    pw_weight : (Cout, C, 1, 1)  1x1 conv weight
    pw_bias   : (Cout,)
    """
    assert stride == 1, "only stride=1 implemented"  # TODO(synk): general stride
    N, C, H, W = x_nchw.shape
    K = dw_weight.shape[-1]
    Cout = pw_weight.shape[0]
    Hout = H + 2 * padding - K + 1
    Wout = W + 2 * padding - K + 1
    Hp, Wp = H + 2 * padding, W + 2 * padding

    TH = _pick_row_tile(Hout, Wout) if row_tile is None else row_tile
    assert Hout % TH == 0, "row tile must divide output height"
    assert (TH * Wout) % 128 == 0 or TH == Hout, \
        "row tile must give a 128-multiple flattened width (lane-dense stores)"
    n_rt = Hout // TH
    n_halo = K - 1

    # ---- wrapper glue (layout + zero padding) -------------------------------
    # TODO(synk): if the surrounding model keeps activations NHWC end-to-end,
    # this input transpose (a full HBM pass) disappears too.
    x_nhwc = jnp.transpose(x_nchw, (0, 2, 3, 1))                   # (N,H,W,C)
    x_pad = jnp.pad(x_nhwc, ((0, 0), (padding, padding),
                             (padding, padding), (0, 0)))          # (N,Hp,Wp,C)

    dww = jnp.transpose(dw_weight[:, 0, :, :], (1, 2, 0)).astype(jnp.float32)   # (K,K,C)
    pww = pw_weight[:, :, 0, 0].astype(jnp.float32)                             # (Cout,C)
    # Fold depthwise bias into pointwise bias:  pw(dw(x)+dwb)+pwb == pw(dw(x)) + (pw@dwb + pwb)
    pwb_eff = (pw_bias.astype(jnp.float32)
               + pww @ dw_bias.astype(jnp.float32)).reshape(Cout, 1)

    kernel = functools.partial(_dwsep_kernel, K=K, TH=TH, W=Wout)

    def _main_map(n, rt):
        return (n, rt, 0, 0)

    def _halo_map(j):
        def imap(n, rt):
            # 1-row blocks => block index along H is the element row index.
            return (n, (rt + 1) * TH + j, 0, 0)
        return imap

    in_specs = (
        [pl.BlockSpec((None, TH, Wp, C), _main_map)]
        + [pl.BlockSpec((None, 1, Wp, C), _halo_map(j)) for j in range(n_halo)]
        + [pl.BlockSpec((K, K, C), lambda n, rt: (0, 0, 0)),
           pl.BlockSpec((Cout, C), lambda n, rt: (0, 0)),
           pl.BlockSpec((Cout, 1), lambda n, rt: (0, 0))]
    )

    out_flat = pl.pallas_call(
        kernel,
        out_shape=jax.ShapeDtypeStruct((N, Cout, Hout * Wout), x_nchw.dtype),
        grid_spec=pltpu.PrefetchScalarGridSpec(
            num_scalar_prefetch=0,
            grid=(N, n_rt),
            in_specs=in_specs,
            out_specs=pl.BlockSpec((None, Cout, TH * Wout),
                                   lambda n, rt: (n, 0, rt)),
            scratch_shapes=[pltpu.VMEM((TH + K - 1, Wp, C), x_nchw.dtype)],
        ),
        compiler_params=pltpu.CompilerParams(
            dimension_semantics=("parallel", "parallel"),
            vmem_limit_bytes=64 * 1024 * 1024),
    )(x_pad, *([x_pad] * n_halo), dww, pww, pwb_eff)

    # Channels-first flattened spatial -> NCHW is a free metadata reshape.
    return out_flat.reshape(N, Cout, Hout, Wout)


def _reference(x_nchw, dw_weight, dw_bias, pw_weight, pw_bias, padding=1):
    """Pure-JAX reference matching nn.Conv2d semantics."""
    C = x_nchw.shape[1]
    y = jax.lax.conv_general_dilated(
        x_nchw, dw_weight, window_strides=(1, 1),
        padding=[(padding, padding), (padding, padding)],
        dimension_numbers=("NCHW", "OIHW", "NCHW"),
        feature_group_count=C)
    y = y + dw_bias[None, :, None, None]
    z = jax.lax.conv_general_dilated(
        y, pw_weight, window_strides=(1, 1), padding=[(0, 0), (0, 0)],
        dimension_numbers=("NCHW", "OIHW", "NCHW"))
    return z + pw_bias[None, :, None, None]


if __name__ == "__main__":
    # Small deterministic problem: N=2, C=4 -> Cout=8, 16x16 spatial, 3x3 kernel.
    N, C, Cout, H, W, K = 2, 4, 8, 16, 16, 3
    key = jax.random.PRNGKey(0)
    kx, k1, k2, k3, k4 = jax.random.split(key, 5)

    x = jax.random.normal(kx, (N, C, H, W), dtype=jnp.float32)
    dw_weight = jax.random.normal(k1, (C, 1, K, K), dtype=jnp.float32) * 0.1
    dw_bias = jax.random.normal(k2, (C,), dtype=jnp.float32) * 0.1
    pw_weight = jax.random.normal(k3, (Cout, C, 1, 1), dtype=jnp.float32) * 0.1
    pw_bias = jax.random.normal(k4, (Cout,), dtype=jnp.float32) * 0.1

    # row_tile=8 -> grid (2, 2): exercises the multi-tile + halo path
    # (TH*Wout = 128, lane-dense output blocks).
    out = depthwise_separable_conv(x, dw_weight, dw_bias, pw_weight, pw_bias,
                                   padding=1, stride=1, row_tile=8)
    out = jax.block_until_ready(out)

    ref = _reference(x, dw_weight, dw_bias, pw_weight, pw_bias, padding=1)
    assert out.shape == (N, Cout, H, W), out.shape
    assert jnp.allclose(out, ref, atol=1e-4, rtol=1e-4), "mismatch vs reference"

    print("KERNEL_OK")
</pallas_src>

<mosaic_0001>
module attributes {stable_mosaic.version = 11 : i64} {
  func.func @_dwsep_kernel(%arg0: i32, %arg1: i32, %arg2: memref<1x8x18x4xf32, #tpu.memory_space<vmem>>, %arg3: memref<1x1x18x4xf32, #tpu.memory_space<vmem>>, %arg4: memref<1x1x18x4xf32, #tpu.memory_space<vmem>>, %arg5: memref<3x3x4xf32, #tpu.memory_space<vmem>>, %arg6: memref<8x4xf32, #tpu.memory_space<vmem>>, %arg7: memref<8x1xf32, #tpu.memory_space<vmem>>, %arg8: memref<1x8x128xf32, #tpu.memory_space<vmem>>, %arg9: memref<10x18x4xf32, #tpu.memory_space<vmem>>) attributes {dimension_semantics = [#tpu.dimension_semantics<parallel>, #tpu.dimension_semantics<parallel>], iteration_bounds = array<i64: 2, 2>, scalar_prefetch = 0 : i64, scratch_operands = 1 : i64, tpu.core_type = #tpu.core_type<tc>, window_params = [{transform_indices = @transform_0, window_bounds = array<i64: 1, 8, 18, 4>}, {transform_indices = @transform_1, window_bounds = array<i64: 1, 1, 18, 4>}, {transform_indices = @transform_2, window_bounds = array<i64: 1, 1, 18, 4>}, {pipeline_mode = #tpu.pipeline_mode<synchronous>, transform_indices = @transform_3, window_bounds = array<i64: 3, 3, 4>}, {pipeline_mode = #tpu.pipeline_mode<synchronous>, transform_indices = @transform_4, window_bounds = array<i64: 8, 4>}, {pipeline_mode = #tpu.pipeline_mode<synchronous>, transform_indices = @transform_5, window_bounds = array<i64: 8, 1>}, {transform_indices = @transform_6, window_bounds = array<i64: 1, 8, 128>}]} {
    %c0 = arith.constant 0 : index
    %c0_0 = arith.constant 0 : index
    %c0_1 = arith.constant 0 : index
    %c0_2 = arith.constant 0 : index
    %0 = vector.load %arg2[%c0, %c0_0, %c0_1, %c0_2] : memref<1x8x18x4xf32, #tpu.memory_space<vmem>>, vector<1x8x18x4xf32>
    %1 = vector.shape_cast %0 : vector<1x8x18x4xf32> to vector<8x18x4xf32>
    %c0_3 = arith.constant 0 : index
    %c0_4 = arith.constant 0 : index
    %c0_5 = arith.constant 0 : index
    %2 = vector.load %arg9[%c0_3, %c0_4, %c0_5] : memref<10x18x4xf32, #tpu.memory_space<vmem>>, vector<8x18x4xf32>
    tpu.vector_store %arg9[%c0_3, %c0_4, %c0_5], %1 {strides = array<i32>} : memref<10x18x4xf32, #tpu.memory_space<vmem>>, vector<8x18x4xf32>,
    %c0_6 = arith.constant 0 : index
    %c0_7 = arith.constant 0 : index
    %c0_8 = arith.constant 0 : index
    %c0_9 = arith.constant 0 : index
    %3 = vector.load %arg3[%c0_6, %c0_7, %c0_8, %c0_9] : memref<1x1x18x4xf32, #tpu.memory_space<vmem>>, vector<1x1x18x4xf32>
    %4 = vector.shape_cast %3 : vector<1x1x18x4xf32> to vector<1x18x4xf32>
    %c8 = arith.constant 8 : index
    %c0_10 = arith.constant 0 : index
    %c0_11 = arith.constant 0 : index
    %5 = vector.load %arg9[%c8, %c0_10, %c0_11] : memref<10x18x4xf32, #tpu.memory_space<vmem>>, vector<1x18x4xf32>
    tpu.vector_store %arg9[%c8, %c0_10, %c0_11], %4 {strides = array<i32>} : memref<10x18x4xf32, #tpu.memory_space<vmem>>, vector<1x18x4xf32>,
    %c0_12 = arith.constant 0 : index
    %c0_13 = arith.constant 0 : index
    %c0_14 = arith.constant 0 : index
    %c0_15 = arith.constant 0 : index
    %6 = vector.load %arg4[%c0_12, %c0_13, %c0_14, %c0_15] : memref<1x1x18x4xf32, #tpu.memory_space<vmem>>, vector<1x1x18x4xf32>
    %7 = vector.shape_cast %6 : vector<1x1x18x4xf32> to vector<1x18x4xf32>
    %c9 = arith.constant 9 : index
    %c0_16 = arith.constant 0 : index
    %c0_17 = arith.constant 0 : index
    %8 = vector.load %arg9[%c9, %c0_16, %c0_17] : memref<10x18x4xf32, #tpu.memory_space<vmem>>, vector<1x18x4xf32>
    tpu.vector_store %arg9[%c9, %c0_16, %c0_17], %7 {strides = array<i32>} : memref<10x18x4xf32, #tpu.memory_space<vmem>>, vector<1x18x4xf32>,
    %c0_18 = arith.constant 0 : index
    %c0_19 = arith.constant 0 : index
    %c0_20 = arith.constant 0 : index
    %9 = vector.load %arg9[%c0_18, %c0_19, %c0_20] : memref<10x18x4xf32, #tpu.memory_space<vmem>>, vector<10x18x4xf32>
    %c0_21 = arith.constant 0 : index
    %c0_22 = arith.constant 0 : index
    %c0_23 = arith.constant 0 : index
    %10 = vector.load %arg5[%c0_21, %c0_22, %c0_23] : memref<3x3x4xf32, #tpu.memory_space<vmem>>, vector<3x3x4xf32>
    %11 = vector.extract_strided_slice %9 {offsets = [0, 0, 0], sizes = [10, 16, 4], strides = [1, 1, 1]} : vector<10x18x4xf32> to vector<10x16x4xf32>
    %12 = vector.extract_strided_slice %9 {offsets = [0, 1, 0], sizes = [10, 16, 4], strides = [1, 1, 1]} : vector<10x18x4xf32> to vector<10x16x4xf32>
    %13 = vector.extract_strided_slice %9 {offsets = [0, 2, 0], sizes = [10, 16, 4], strides = [1, 1, 1]} : vector<10x18x4xf32> to vector<10x16x4xf32>
    %cst = arith.constant 0.000000e+00 : f32
    %14 = vector.broadcast %cst : f32 to vector<8x16x4xf32>
    %15 = vector.extract_strided_slice %11 {offsets = [0, 0, 0], sizes = [8, 16, 4], strides = [1, 1, 1]} : vector<10x16x4xf32> to vector<8x16x4xf32>
    %16 = vector.extract_strided_slice %10 {offsets = [0, 0, 0], sizes = [1, 1, 4], strides = [1, 1, 1]} : vector<3x3x4xf32> to vector<1x1x4xf32>
    %17 = vector.shape_cast %16 : vector<1x1x4xf32> to vector<4xf32>
    %18 = vector.shape_cast %17 : vector<4xf32> to vector<1x1x4xf32>
    %19 = vector.broadcast %18 : vector<1x1x4xf32> to vector<8x16x4xf32>
    %20 = arith.mulf %15, %19 : vector<8x16x4xf32>
    %21 = arith.addf %14, %20 : vector<8x16x4xf32>
    %22 = vector.extract_strided_slice %12 {offsets = [0, 0, 0], sizes = [8, 16, 4], strides = [1, 1, 1]} : vector<10x16x4xf32> to vector<8x16x4xf32>
    %23 = vector.extract_strided_slice %10 {offsets = [0, 1, 0], sizes = [1, 1, 4], strides = [1, 1, 1]} : vector<3x3x4xf32> to vector<1x1x4xf32>
    %24 = vector.shape_cast %23 : vector<1x1x4xf32> to vector<4xf32>
    %25 = vector.shape_cast %24 : vector<4xf32> to vector<1x1x4xf32>
    %26 = vector.broadcast %25 : vector<1x1x4xf32> to vector<8x16x4xf32>
    %27 = arith.mulf %22, %26 : vector<8x16x4xf32>
    %28 = arith.addf %21, %27 : vector<8x16x4xf32>
    %29 = vector.extract_strided_slice %13 {offsets = [0, 0, 0], sizes = [8, 16, 4], strides = [1, 1, 1]} : vector<10x16x4xf32> to vector<8x16x4xf32>
    %30 = vector.extract_strided_slice %10 {offsets = [0, 2, 0], sizes = [1, 1, 4], strides = [1, 1, 1]} : vector<3x3x4xf32> to vector<1x1x4xf32>
    %31 = vector.shape_cast %30 : vector<1x1x4xf32> to vector<4xf32>
    %32 = vector.shape_cast %31 : vector<4xf32> to vector<1x1x4xf32>
    %33 = vector.broadcast %32 : vector<1x1x4xf32> to vector<8x16x4xf32>
    %34 = arith.mulf %29, %33 : vector<8x16x4xf32>
    %35 = arith.addf %28, %34 : vector<8x16x4xf32>
    %36 = vector.extract_strided_slice %11 {offsets = [1, 0, 0], sizes = [8, 16, 4], strides = [1, 1, 1]} : vector<10x16x4xf32> to vector<8x16x4xf32>
    %37 = vector.extract_strided_slice %10 {offsets = [1, 0, 0], sizes = [1, 1, 4], strides = [1, 1, 1]} : vector<3x3x4xf32> to vector<1x1x4xf32>
    %38 = vector.shape_cast %37 : vector<1x1x4xf32> to vector<4xf32>
    %39 = vector.shape_cast %38 : vector<4xf32> to vector<1x1x4xf32>
    %40 = vector.broadcast %39 : vector<1x1x4xf32> to vector<8x16x4xf32>
    %41 = arith.mulf %36, %40 : vector<8x16x4xf32>
    %42 = arith.addf %35, %41 : vector<8x16x4xf32>
    %43 = vector.extract_strided_slice %12 {offsets = [1, 0, 0], sizes = [8, 16, 4], strides = [1, 1, 1]} : vector<10x16x4xf32> to vector<8x16x4xf32>
    %44 = vector.extract_strided_slice %10 {offsets = [1, 1, 0], sizes = [1, 1, 4], strides = [1, 1, 1]} : vector<3x3x4xf32> to vector<1x1x4xf32>
    %45 = vector.shape_cast %44 : vector<1x1x4xf32> to vector<4xf32>
    %46 = vector.shape_cast %45 : vector<4xf32> to vector<1x1x4xf32>
    %47 = vector.broadcast %46 : vector<1x1x4xf32> to vector<8x16x4xf32>
    %48 = arith.mulf %43, %47 : vector<8x16x4xf32>
    %49 = arith.addf %42, %48 : vector<8x16x4xf32>
    %50 = vector.extract_strided_slice %13 {offsets = [1, 0, 0], sizes = [8, 16, 4], strides = [1, 1, 1]} : vector<10x16x4xf32> to vector<8x16x4xf32>
    %51 = vector.extract_strided_slice %10 {offsets = [1, 2, 0], sizes = [1, 1, 4], strides = [1, 1, 1]} : vector<3x3x4xf32> to vector<1x1x4xf32>
    %52 = vector.shape_cast %51 : vector<1x1x4xf32> to vector<4xf32>
    %53 = vector.shape_cast %52 : vector<4xf32> to vector<1x1x4xf32>
    %54 = vector.broadcast %53 : vector<1x1x4xf32> to vector<8x16x4xf32>
    %55 = arith.mulf %50, %54 : vector<8x16x4xf32>
    %56 = arith.addf %49, %55 : vector<8x16x4xf32>
    %57 = vector.extract_strided_slice %11 {offsets = [2, 0, 0], sizes = [8, 16, 4], strides = [1, 1, 1]} : vector<10x16x4xf32> to vector<8x16x4xf32>
    %58 = vector.extract_strided_slice %10 {offsets = [2, 0, 0], sizes = [1, 1, 4], strides = [1, 1, 1]} : vector<3x3x4xf32> to vector<1x1x4xf32>
    %59 = vector.shape_cast %58 : vector<1x1x4xf32> to vector<4xf32>
    %60 = vector.shape_cast %59 : vector<4xf32> to vector<1x1x4xf32>
    %61 = vector.broadcast %60 : vector<1x1x4xf32> to vector<8x16x4xf32>
    %62 = arith.mulf %57, %61 : vector<8x16x4xf32>
    %63 = arith.addf %56, %62 : vector<8x16x4xf32>
    %64 = vector.extract_strided_slice %12 {offsets = [2, 0, 0], sizes = [8, 16, 4], strides = [1, 1, 1]} : vector<10x16x4xf32> to vector<8x16x4xf32>
    %65 = vector.extract_strided_slice %10 {offsets = [2, 1, 0], sizes = [1, 1, 4], strides = [1, 1, 1]} : vector<3x3x4xf32> to vector<1x1x4xf32>
    %66 = vector.shape_cast %65 : vector<1x1x4xf32> to vector<4xf32>
    %67 = vector.shape_cast %66 : vector<4xf32> to vector<1x1x4xf32>
    %68 = vector.broadcast %67 : vector<1x1x4xf32> to vector<8x16x4xf32>
    %69 = arith.mulf %64, %68 : vector<8x16x4xf32>
    %70 = arith.addf %63, %69 : vector<8x16x4xf32>
    %71 = vector.extract_strided_slice %13 {offsets = [2, 0, 0], sizes = [8, 16, 4], strides = [1, 1, 1]} : vector<10x16x4xf32> to vector<8x16x4xf32>
    %72 = vector.extract_strided_slice %10 {offsets = [2, 2, 0], sizes = [1, 1, 4], strides = [1, 1, 1]} : vector<3x3x4xf32> to vector<1x1x4xf32>
    %73 = vector.shape_cast %72 : vector<1x1x4xf32> to vector<4xf32>
    %74 = vector.shape_cast %73 : vector<4xf32> to vector<1x1x4xf32>
    %75 = vector.broadcast %74 : vector<1x1x4xf32> to vector<8x16x4xf32>
    %76 = arith.mulf %71, %75 : vector<8x16x4xf32>
    %77 = arith.addf %70, %76 : vector<8x16x4xf32>
    %78 = vector.shape_cast %77 : vector<8x16x4xf32> to vector<128x4xf32>
    %c0_24 = arith.constant 0 : index
    %c0_25 = arith.constant 0 : index
    %79 = vector.load %arg6[%c0_24, %c0_25] : memref<8x4xf32, #tpu.memory_space<vmem>>, vector<8x4xf32>
    %cst_26 = arith.constant dense<0.000000e+00> : vector<8x128xf32>
    %80 = tpu.matmul %79, %78, %cst_26 {dimension_numbers = #tpu.dot_dimension_numbers<[1], [1], [0], [0], [0, 0, 1, 0], [], []>} : vector<8x4xf32>, vector<128x4xf32>, vector<8x128xf32> -> vector<8x128xf32>
    %c0_27 = arith.constant 0 : index
    %c0_28 = arith.constant 0 : index
    %81 = vector.load %arg7[%c0_27, %c0_28] : memref<8x1xf32, #tpu.memory_space<vmem>>, vector<8x1xf32>
    %82 = vector.broadcast %81 : vector<8x1xf32> to vector<8x128xf32>
    %83 = arith.addf %80, %82 : vector<8x128xf32>
    %c0_29 = arith.constant 0 : index
    %c0_30 = arith.constant 0 : index
    %c0_31 = arith.constant 0 : index
    %84 = vector.load %arg8[%c0_29, %c0_30, %c0_31] : memref<1x8x128xf32, #tpu.memory_space<vmem>>, vector<1x8x128xf32>
    %85 = vector.shape_cast %84 : vector<1x8x128xf32> to vector<8x128xf32>
    %86 = vector.shape_cast %83 : vector<8x128xf32> to vector<1x8x128xf32>
    tpu.vector_store %arg8[%c0_29, %c0_30, %c0_31], %86 {strides = array<i32>} : memref<1x8x128xf32, #tpu.memory_space<vmem>>, vector<1x8x128xf32>,
    return
  }
  func.func @transform_0(%arg0: i32, %arg1: i32) -> (i32, i32, i32, i32) {
    %c0_i32 = arith.constant 0 : i32
    %c0_i32_0 = arith.constant 0 : i32
    %c0_i32_1 = arith.constant 0 : i32
    return %arg0, %arg1, %c0_i32, %c0_i32_0 : i32, i32, i32, i32
  }
  func.func @transform_1(%arg0: i32, %arg1: i32) -> (i32, i32, i32, i32) {
    %c1_i32 = arith.constant 1 : i32
    %0 = arith.addi %arg1, %c1_i32 : i32
    %c8_i32 = arith.constant 8 : i32
    %1 = arith.muli %0, %c8_i32 : i32
    %c0_i32 = arith.constant 0 : i32
    %2 = arith.addi %1, %c0_i32 : i32
    %c0_i32_0 = arith.constant 0 : i32
    %c0_i32_1 = arith.constant 0 : i32
    %c0_i32_2 = arith.constant 0 : i32
    return %arg0, %2, %c0_i32_0, %c0_i32_1 : i32, i32, i32, i32
  }
  func.func @transform_2(%arg0: i32, %arg1: i32) -> (i32, i32, i32, i32) {
    %c1_i32 = arith.constant 1 : i32
    %0 = arith.addi %arg1, %c1_i32 : i32
    %c8_i32 = arith.constant 8 : i32
    %1 = arith.muli %0, %c8_i32 : i32
    %c1_i32_0 = arith.constant 1 : i32
    %2 = arith.addi %1, %c1_i32_0 : i32
    %c0_i32 = arith.constant 0 : i32
    %c0_i32_1 = arith.constant 0 : i32
    %c0_i32_2 = arith.constant 0 : i32
    return %arg0, %2, %c0_i32, %c0_i32_1 : i32, i32, i32, i32
  }
  func.func @transform_3(%arg0: i32, %arg1: i32) -> (i32, i32, i32) {
    %c0_i32 = arith.constant 0 : i32
    %c0_i32_0 = arith.constant 0 : i32
    %c0_i32_1 = arith.constant 0 : i32
    %c0_i32_2 = arith.constant 0 : i32
    return %c0_i32, %c0_i32_0, %c0_i32_1 : i32, i32, i32
  }
  func.func @transform_4(%arg0: i32, %arg1: i32) -> (i32, i32) {
    %c0_i32 = arith.constant 0 : i32
    %c0_i32_0 = arith.constant 0 : i32
    %c0_i32_1 = arith.constant 0 : i32
    return %c0_i32, %c0_i32_0 : i32, i32
  }
  func.func @transform_5(%arg0: i32, %arg1: i32) -> (i32, i32) {
    %c0_i32 = arith.constant 0 : i32
    %c0_i32_0 = arith.constant 0 : i32
    %c0_i32_1 = arith.constant 0 : i32
    return %c0_i32, %c0_i32_0 : i32, i32
  }
  func.func @transform_6(%arg0: i32, %arg1: i32) -> (i32, i32, i32) {
    %c0_i32 = arith.constant 0 : i32
    %c0_i32_0 = arith.constant 0 : i32
    return %arg0, %c0_i32, %arg1 : i32, i32, i32
  }
}

</mosaic_0001>

<bundles_post_ra>
// kernel: tpu_custom_call.1
= control target key start
LH: loop header
LB: loop body
LE: loop exit
PB: predicated region body
PF: predicated region fallthrough
CT: control target
= control target key end

     0   :  { %11 = vsyncpa [#allocation4], 0  ;;  %s2848_s0 = inlined_call_operand.vmem [shape: f32[2,18,18,4], index: 0, kind: input, shape index: {}]   ;;  %s2849_s1 = inlined_call_operand.vmem [shape: f32[2,18,18,4], index: 1, kind: input, shape index: {}]   ;;  %s2850_s2 = inlined_call_operand.vmem [shape: f32[2,18,18,4], index: 2, kind: input, shape index: {}]   ;;  %s2851_s3 = inlined_call_operand.vmem [shape: f32[3,3,4], index: 3, kind: input, shape index: {}]   ;;  %s2852_s4 = inlined_call_operand.vmem [shape: f32[8,4], index: 4, kind: input, shape index: {}]   ;;  %s2853_s5 = inlined_call_operand.vmem [shape: f32[8,1], index: 5, kind: input, shape index: {}]   ;;  %s2854_s6 = inlined_call_operand.hbm [shape: f32[2,8,256], index: 6, kind: output, shape index: {}]  }
   0x1   :  { %13 = vsyncpa [#allocation4 + $0x1], 0  ;;  %s1944_s21 = smov 0   ;;  %s1946_s22 = smov 0  }
   0x2   :  { %s1948_s23 = smov 0   ;;  %s1950_s24 = smov 0  }
   0x3   :  { %s1952_s25 = smov 0   ;;  %s1954_s26 = smov 0  }
   0x4   :  { %s1956_s27 = smov 0   ;;  %s1958_s28 = smov 0  }
   0x5 LB: > { %s1630_s29 = sadd.s32 4294967295, %s1903_s28   ;;  %s1631_s30 = sadd.s32 4294967294, %s1903_s28   ;;  %s1903_s28 = sphi %s1958_s28, %s19_s28   ;;  %s1899_s27 = sphi %s1956_s27, %s2870_s27   ;;  %s1895_s26 = sphi %s1954_s26, %s2869_s26   ;;  %s1891_s25 = sphi %s1952_s25, %s2868_s25   ;;  %s1887_s24 = sphi %s1950_s24, %s2867_s24   ;;  %s1883_s23 = sphi %s1948_s23, %s2866_s23   ;;  %s1879_s22 = sphi %s1946_s22, %s2865_s22   ;;  %s1875_s21 = sphi %s1944_s21, %s2864_s21  }
   0x6   : > { %s28_s7 = sadd.s32 1, %s1895_s26  ;;  %s31_s8 = sadd.s32 1, %s1899_s27 }
   0x7   : > { %p29_p0 = scmp.ge.s32.totalorder %s28_s7, 2  ;;  %p207_p1 = scmp.ne.s32.totalorder %s1883_s23, %s1879_s22 }
   0x8   : > { %p208_p2 = scmp.eq.s32.totalorder %s1630_s29, 3  ;;  %p213_p5 = scmp.ne.s32.totalorder %s1879_s22, %s1875_s21 }
   0x9   : > { %s2872_s7 = smov (%p29_p0, %s28_s7), 0  ;;  %s2874_s8 = smov (!%p29_p0, %s31_s8), %s1899_s27 }
   0xa   : > { %2857 = sst [smem:[#allocation6_spill]] %s2872_s7  ;;  %s193_s9 = ssub.s32 %s1895_s26, %s2872_s7 }
   0xb   : > { %p1995_p3 = por %p208_p2, %p207_p1  ;;  %p33_p4 = scmp.ge.s32.totalorder %s2874_s8, 2 }
   0xc   : > { %p214_p6 = scmp.eq.s32.totalorder %s1631_s30, 3  ;;  %p1638_p7 = scmp.ge.s32.totalorder %s1903_s28, 1 }
   0xd   : > { %s2876_s8 = smov (%p33_p4, %s2874_s8), 0  ;;  %p299_p9 = scmp.lt.s32.totalorder %s1903_s28, 5 }
   0xe   : > { %2859 = sst [smem:[#allocation7_spill]] %s2876_s8  ;;  %p2004_p8 = por %p214_p6, %p213_p5 }
   0xf   : > { %s192_s12 = ssub.s32 %s1899_s27, %s2876_s8  ;;  %s197_s13 = sadd.s32 1, %s1883_s23 }
  0x10   : > { %s194_s14 = sor.u32 %s193_s9, %s192_s12  ;;  %p300_p10 = pnand %p1638_p7, %p299_p9 }
  0x11   : > { %p195_p11 = scmp.eq.s32.totalorder %s194_s14, 0  ;;  %s1640_s16 = sshll.u32 (!%p300_p10), %s1887_s24, 3 }
  0x12   : > { %303 = sbr.rel (%p300_p10) target bundleno = 405 (0x195), region = 44  ;;  %p368_p12 = scmp.lt.s32.totalorder (!%p300_p10), %s1891_s25, 1 }
  0x13   : > { %s2013_s15 = scalar_select %p195_p11, %s1883_s23, %s197_s13  }
  0x14   : > { %p370_p13 = scmp.lt.s32.totalorder (!%p300_p10), %s1640_s16, 17  ;;  %s2018_s17 = sadd.s32 (!%p300_p10), 8, %s1640_s16 }
  0x15   : > { %p387_p0 = scmp.lt.s32.totalorder (!%p300_p10), %s2018_s17, 17  ;;  %s398_s29 = sadd.s32 (!%p300_p10), 1, %s2018_s17 }
  0x16   : > { %p2034_p1 = scmp.lt.s32.totalorder (!%p300_p10), %s398_s29, 17 }
  0x17   : > { %v1905_v0 = vmov 0.0   ;;  %s369_s18 = scalar_select %p368_p12, %s1891_s25, 1  ;;  %v508_v1 = vlaneseq  ;;  %vm435_vm0 = vcmask 31744   ;;  %vm438_vm1 = vcmask 25600   ;;  %v505_v5 = vld [vmem:[%s2851_s3] sm:$0x7] }
  0x18   : > { %1697 = vmatprep.subr.mxu0 %v1905_v0  ;;  %s2878_s16 = smov (!%p370_p13, %s1640_s16), 17  ;;  %v506_v13 = vld [vmem:[%s2851_s3 + $0x4] sm:$0x7]  ;;  %s2880_s29 = smov (!%p2034_p1, %s398_s29), 17  ;;  %v507_v20 = vld [vmem:[%s2851_s3 + $0x8] sm:$0x7] }
  0x19   : > { %s2021_s19 = smul.u32 54, %s369_s18  ;;  %v509_v2 = vshrl.u32 %v508_v1, 7  ;;  %vm596_vm2 = vcmask 1046528   ;;  %vm721_vm3 = vcmask 1045504   ;;  %vm1906_vm4 = vmmov 0  }
  0x1a   : > { %s1732_s20 = smul.u32 3, %s2878_s16  ;;  %1729 = vmatprep.mubr.msk.f32.mxu0 %vm1906_vm4, %v1905_v0 }
  0x1b   : > { %s388_s30 = scalar_select %p387_p0, %s2018_s17, 17  ;;  %v2044_v6 = vsub.s32 0, %v509_v2  ;;  %v2046_v7 = vsub.s32 1, %v509_v2  ;;  %v671_v9 = vsub.s32 2, %v509_v2 }
  0x1c   : > { %s374_s9 = sadd.s32 %s2021_s19, %s1732_s20  ;;  %s1735_s17 = smul.u32 3, %s2880_s29 }
  0x1d   : > { %s1641_s12 = sshll.u32 %s374_s9, 3  ;;  %s1734_s13 = smul.u32 3, %s388_s30  ;;  %v2087_v24 = vrot.slane %v505_v5, %v2044_v6  ;;  %v2090_v25 = vrot.slane %v505_v5, %v2046_v7  ;;  %v2092_v26 = vrot.slane %v505_v5, %v671_v9  ;;  %v2108_v33 = vrot.slane %v506_v13, %v2044_v6 }
  0x1e   : > { %s2030_s7 = scalar_lea.vmem %s2848_s0, %s1641_s12  ;;  %s405_s29 = sadd.s32 %s1735_s17, %s2021_s19  ;;  %v2111_v34 = vrot.slane %v506_v13, %v2046_v7  ;;  %v2123_v40 = vrot.slane %v506_v13, %v671_v9  ;;  %v2126_v41 = vrot.slane %v507_v20, %v2044_v6  ;;  %v2129_v42 = vrot.slane %v507_v20, %v2046_v7 }
  0x1f   : > { %s391_s18 = sadd.s32 %s1734_s13, %s2021_s19  ;;  %v433_v3 = vld [vmem:[%s2030_s7 + $0xb0] sm:$0xff]  ;;  %v434_v4 = vld [vmem:[%s2030_s7 + $0xb8] sm:$0x3]  ;;  %v432_v8 = vld [vmem:[%s2030_s7 + $0xa8] sm:$0xff]  ;;  %s1645_s16 = sshll.u32 %s405_s29, 3  ;;  %v2131_v43 = vrot.slane %v507_v20, %v671_v9 }
  0x20   : > { %s1643_s8 = sshll.u32 %s391_s18, 3  ;;  %459 = vst.msk [vmem:[#allocation2 + $0xb0] sm:$0xff] %vm435_vm0, %v433_v3  ;;  %458 = vst.msk [vmem:[#allocation2 + $0xa8] sm:$0xff] %vm435_vm0, %v432_v8  ;;  %v430_v10 = vld [vmem:[%s2030_s7 + $0x98] sm:$0xff]  ;;  %v431_v11 = vld [vmem:[%s2030_s7 + $0xa0] sm:$0x3]  ;;  %s407_s9 = scalar_lea.vmem %s2850_s2, %s1645_s16 }
  0x21   : > { %460 = vst.msk [vmem:[#allocation2 + $0xb8] sm:$0x3] %vm438_vm1, %v434_v4  ;;  %v429_v12 = vld [vmem:[%s2030_s7 + $0x90] sm:$0xff]  ;;  %s393_s13 = scalar_lea.vmem %s2849_s1, %s1643_s8  ;;  %457 = vst.msk [vmem:[#allocation2 + $0xa0] sm:$0x3] %vm438_vm1, %v431_v11  ;;  %v427_v14 = vld [vmem:[%s2030_s7 + $0x80] sm:$0xff] }
  0x22   : > { %456 = vst.msk [vmem:[#allocation2 + $0x98] sm:$0xff] %vm435_vm0, %v430_v10  ;;  %455 = vst.msk [vmem:[#allocation2 + $0x90] sm:$0xff] %vm435_vm0, %v429_v12  ;;  %v428_v15 = vld [vmem:[%s2030_s7 + $0x88] sm:$0x3]  ;;  %v426_v16 = vld [vmem:[%s2030_s7 + $0x78] sm:$0xff]  ;;  %s359_s20 = sand.u32 1, %s1879_s22  }
  0x23   : > { %v461_v17 = vld [vmem:[%s393_s13] sm:$0xff]  ;;  %v462_v18 = vld [vmem:[%s393_s13 + $0x8] sm:$0xff]  ;;  %v463_v19 = vld [vmem:[%s393_s13 + $0x10] sm:$0x3]  ;;  %453 = vst.msk [vmem:[#allocation2 + $0x80] sm:$0xff] %vm435_vm0, %v427_v14  ;;  %s1639_s18 = sshll.u32 %s359_s20, 3 }
  0x24   : > { %454 = vst.msk [vmem:[#allocation2 + $0x88] sm:$0x3] %vm438_vm1, %v428_v15  ;;  %467 = vst.msk [vmem:[#allocation2 + $0xd0] sm:$0x3] %vm438_vm1, %v463_v19  ;;  %v424_v21 = vld [vmem:[%s2030_s7 + $0x68] sm:$0xff]  ;;  %v423_v23 = vld [vmem:[%s2030_s7 + $0x60] sm:$0xff] }
  0x25   : > { %452 = vst.msk [vmem:[#allocation2 + $0x78] sm:$0xff] %vm435_vm0, %v426_v16  ;;  %465 = vst.msk [vmem:[#allocation2 + $0xc0] sm:$0xff] %vm435_vm0, %v461_v17  ;;  %v425_v22 = vld [vmem:[%s2030_s7 + $0x70] sm:$0x3]  ;;  %v422_v28 = vld [vmem:[%s2030_s7 + $0x58] sm:$0x3] }
  0x26   : > { %466 = vst.msk [vmem:[#allocation2 + $0xc8] sm:$0xff] %vm435_vm0, %v462_v18  ;;  %450 = vst.msk [vmem:[#allocation2 + $0x68] sm:$0xff] %vm435_vm0, %v424_v21  ;;  %v421_v27 = vld [vmem:[%s2030_s7 + $0x50] sm:$0xff]  ;;  %v420_v29 = vld [vmem:[%s2030_s7 + $0x48] sm:$0xff]  ;;  %s1664_s30 = sshll.u32 %s1891_s25, 1  ;;  %s361_s16 = scalar_lea.vmem [#allocation3], %s1639_s18 }
  0x27   : > { %451 = vst.msk [vmem:[#allocation2 + $0x70] sm:$0x3] %vm438_vm1, %v425_v22  ;;  %448 = vst.msk [vmem:[#allocation2 + $0x58] sm:$0x3] %vm438_vm1, %v422_v28  ;;  %v418_v30 = vld [vmem:[%s2030_s7 + $0x38] sm:$0xff]  ;;  %v417_v32 = vld [vmem:[%s2030_s7 + $0x30] sm:$0xff]  ;;  %s1503_s17 = sadd.s32 %s1887_s24, %s1664_s30 }
  0x28   : > { %449 = vst.msk [vmem:[#allocation2 + $0x60] sm:$0xff] %vm435_vm0, %v423_v23  ;;  %447 = vst.msk [vmem:[#allocation2 + $0x50] sm:$0xff] %vm435_vm0, %v421_v27  ;;  %v419_v31 = vld [vmem:[%s2030_s7 + $0x40] sm:$0x3]  ;;  %v416_v36 = vld [vmem:[%s2030_s7 + $0x28] sm:$0x3] }
  0x29   : > { %446 = vst.msk [vmem:[#allocation2 + $0x48] sm:$0xff] %vm435_vm0, %v420_v29  ;;  %444 = vst.msk [vmem:[#allocation2 + $0x38] sm:$0xff] %vm435_vm0, %v418_v30  ;;  %v415_v35 = vld [vmem:[%s2030_s7 + $0x20] sm:$0xff]  ;;  %v414_v37 = vld [vmem:[%s2030_s7 + $0x18] sm:$0xff]  ;;  %s1665_s29 = sshll.u32 %s1503_s17, 7  ;;  %s1507_s19 = sshll.u32 %s361_s16, 4  ;;  %s1508_s19 = int_to_ptr.vmem [resolvable:$true] %s1507_s19 }
  0x2a   : > { %445 = vst.msk [vmem:[#allocation2 + $0x40] sm:$0x3] %vm438_vm1, %v419_v31  ;;  %v2119_v38 = vld [vmem:[#allocation2 + $0xb0] sm:$0xff]  ;;  %v2121_v39 = vld [vmem:[#allocation2 + $0xb8] sm:$0x3]  ;;  %v2133_v44 = vld [vmem:[#allocation2 + $0xa8] sm:$0xff] }
  0x2b   : > { %443 = vst.msk [vmem:[#allocation2 + $0x30] sm:$0xff] %vm435_vm0, %v417_v32  ;;  %441 = vst.msk [vmem:[#allocation2 + $0x20] sm:$0xff] %vm435_vm0, %v415_v35  ;;  %v527_v45 = vmul.f32 %v2087_v24, %v2119_v38  ;;  %v570_v46 = vmul.f32 %v2090_v25, %v2119_v38  ;;  %v571_v47 = vmul.f32 %v2090_v25, %v2121_v39  ;;  %v2149_v49 = vld [vmem:[#allocation2 + $0x98] sm:$0xff]  ;;  %v468_v50 = vld [vmem:[%s407_s9] sm:$0xff]  ;;  %s1492_s12 = scalar_lea.sflag [#allocation4], %s359_s20  ;;  %s1811_s13 = scalar_lea.vmem %s1508_s19, 128 }
  0x2c   : > { %442 = vst.msk [vmem:[#allocation2 + $0x28] sm:$0x3] %vm438_vm1, %v416_v36  ;;  %v695_v48 = vmul.f32 %v2092_v26, %v2119_v38  ;;  %v469_v51 = vld [vmem:[%s407_s9 + $0x8] sm:$0xff]  ;;  %v470_v52 = vld [vmem:[%s407_s9 + $0x10] sm:$0x3]  ;;  %v696_v53 = vmul.f32 %v2092_v26, %v2121_v39  ;;  %v526_v54 = vmul.f32 %v2087_v24, %v2133_v44  ;;  %v569_v55 = vmul.f32 %v2090_v25, %v2133_v44  ;;  %v2181_v7 = vld [vmem:[#allocation2 + $0xc0] sm:$0xff]  ;;  %p1812_p2 = scmp.ne.s32.totalorder %s1508_s19, %s1811_s13 }
  0x2d   : > { %440 = vst.msk [vmem:[#allocation2 + $0x18] sm:$0xff] %vm435_vm0, %v414_v37  ;;  %v694_v56 = vmul.f32 %v2092_v26, %v2133_v44  ;;  %473 = vst.msk [vmem:[#allocation2 + $0xe0] sm:$0xff] %vm435_vm0, %v469_v51  ;;  %v2161_v57 = vld [vmem:[#allocation2 + $0xc8] sm:$0xff]  ;;  %v2163_v58 = vld [vmem:[#allocation2 + $0xd0] sm:$0x3]  ;;  %v633_v59 = vrot.slane %v570_v46, 1  ;;  %v2168_v62 = vmul.f32 %v2087_v24, %v2149_v49  ;;  %v812_v21 = vmul.f32 %v2108_v33, %v2181_v7 }
  0x2e   : > { %474 = vst.msk [vmem:[#allocation2 + $0xe8] sm:$0x3] %vm438_vm1, %v470_v52  ;;  %v635_v60 = vrot.slane %v571_v47, 1  ;;  %v758_v61 = vrot.slane %v695_v48, 2  ;;  %v760_v63 = vrot.slane %v696_v53, 2  ;;  %v813_v1 = vmul.f32 %v2108_v33, %v2161_v57  ;;  %v412_v29 = vld [vmem:[%s2030_s7 + $0x8] sm:$0xff]  ;;  %p1813_p4 = pnand %p1812_p2, %p1995_p3 }
  0x2f   : > { %472 = vst.msk [vmem:[#allocation2 + $0xd8] sm:$0xff] %vm435_vm0, %v468_v50  ;;  %v856_v2 = vmul.f32 %v2111_v34, %v2161_v57  ;;  %v857_v3 = vmul.f32 %v2111_v34, %v2163_v58  ;;  %v980_v5 = vmul.f32 %v2123_v40, %v2161_v57  ;;  %v981_v6 = vmul.f32 %v2123_v40, %v2163_v58  ;;  %v2185_v17 = vld [vmem:[#allocation2 + $0xa0] sm:$0x3]  ;;  %v413_v30 = vld [vmem:[%s2030_s7 + $0x10] sm:$0x3]  ;;  %s1908_s24 = smov [#allocation3]  }
  0x30   : > { %v636_v4 = vsel %vm596_vm2, %v633_v59, %v635_v60  ;;  %v632_v8 = vrot.slane %v569_v55, 1  ;;  %v761_v10 = vsel %vm721_vm3, %v758_v61, %v760_v63  ;;  %v757_v16 = vrot.slane %v694_v56, 2  ;;  %437 = vst.msk [vmem:[#allocation2 + $0x8] sm:$0xff] %vm435_vm0, %v412_v29  ;;  %v411_v52 = vld [vmem:[%s2030_s7] sm:$0xff]  ;;  %s2802_s7 = scalar_lea.hbm %s2854_s6, %s1665_s29  ;;  %p1814_p5 = pneg %p1813_p4 }
  0x31   : > { %v668_v9 = vadd.f32 %v636_v4, %v527_v45  ;;  %v918_v11 = vrot.slane %v856_v2, 1  ;;  %v920_v12 = vrot.slane %v857_v3, 1  ;;  %v1042_v13 = vrot.slane %v980_v5, 2  ;;  %439 = vst.msk [vmem:[#allocation2 + $0x10] sm:$0x3] %vm438_vm1, %v413_v30  ;;  %s1815_s25 = sshll.u32 %s1908_s24, 4  ;;  %s1816_s25 = int_to_ptr.vmem [resolvable:$false] %s1815_s25 }
  0x32   : > { %v1044_v14 = vrot.slane %v981_v6, 2  ;;  %v634_v15 = vsel %vm596_vm2, %v632_v8, %v633_v59  ;;  %v759_v23 = vsel %vm721_vm3, %v757_v16, %v758_v61  ;;  %v855_v27 = vmul.f32 %v2111_v34, %v2181_v7  ;;  %436 = vst.msk [vmem:[#allocation2] sm:$0xff] %vm435_vm0, %v411_v52  ;;  %s1817_s14 = scalar_lea.vmem %s1816_s25, 256  ;;  %p1818_p6 = scmp.lt.s32.totalorder %s1508_s19, %s1816_s25 }
  0x33   : > { %v793_v18 = vadd.f32 %v761_v10, %v668_v9  ;;  %v921_v19 = vsel %vm596_vm2, %v918_v11, %v920_v12  ;;  %v667_v20 = vadd.f32 %v634_v15, %v526_v54  ;;  %v979_v28 = vmul.f32 %v2123_v40, %v2181_v7  ;;  %p1819_p7 = scmp.lt.s32.totalorder %s1817_s14, %s1811_s13 }
  0x34   : > { %v1045_v22 = vsel %vm721_vm3, %v1042_v13, %v1044_v14  ;;  %v503_v31 = vld [vmem:[#allocation2 + $0xe0] sm:$0xff]  ;;  %v2200_v37 = vmul.f32 %v2090_v25, %v2149_v49  ;;  %v568_v45 = vmul.f32 %v2090_v25, %v2185_v17  ;;  %v917_v56 = vrot.slane %v855_v27, 1 }
  0x35   : > { %v504_v32 = vld [vmem:[#allocation2 + $0xe8] sm:$0x3]  ;;  %v829_v35 = vadd.f32 %v813_v1, %v793_v18  ;;  %v792_v36 = vadd.f32 %v759_v23, %v667_v20  ;;  %v1097_v46 = vmul.f32 %v2126_v41, %v503_v31  ;;  %v1140_v47 = vmul.f32 %v2129_v42, %v503_v31  ;;  %p1820_p9 = por %p1819_p7, %p1818_p6 }
  0x36   : > { %v1141_v48 = vmul.f32 %v2129_v42, %v504_v32  ;;  %v1264_v50 = vmul.f32 %v2131_v43, %v503_v31  ;;  %v502_v51 = vld [vmem:[#allocation2 + $0xd8] sm:$0xff]  ;;  %v1265_v54 = vmul.f32 %v2131_v43, %v504_v32  ;;  %v1041_v63 = vrot.slane %v979_v28, 2 }
  0x37   : > { %v953_v53 = vadd.f32 %v921_v19, %v829_v35  ;;  %v828_v55 = vadd.f32 %v812_v21, %v792_v36  ;;  %v1202_v59 = vrot.slane %v1140_v47, 1  ;;  %v919_v3 = vsel %vm596_vm2, %v917_v56, %v918_v11  ;;  %p1821_p10 = pnand %p1820_p9, %p1814_p5 }
  0x38   : > { %v1204_v60 = vrot.slane %v1141_v48, 1  ;;  %v1326_v61 = vrot.slane %v1264_v50, 2  ;;  %v1328_v2 = vrot.slane %v1265_v54, 2  ;;  %v1096_v4 = vmul.f32 %v2126_v41, %v502_v51  ;;  %v2244_v54 = vld [vmem:[#allocation2 + $0x90] sm:$0xff] }
  0x39   : > { %v1077_v1 = vadd.f32 %v1045_v22, %v953_v53  ;;  %v952_v6 = vadd.f32 %v919_v3, %v828_v55  ;;  %v1043_v8 = vsel %vm721_vm3, %v1041_v63, %v1042_v13  ;;  %v1139_v9 = vmul.f32 %v2129_v42, %v502_v51 }
  0x3a   : > { %v1205_v5 = vsel %vm596_vm2, %v1202_v59, %v1204_v60  ;;  %v1329_v12 = vsel %vm721_vm3, %v1326_v61, %v1328_v2  ;;  %v1263_v14 = vmul.f32 %v2131_v43, %v502_v51  ;;  %v628_v15 = vrot.slane %v2200_v37, 1 }
  0x3b   : > { %v1113_v10 = vadd.f32 %v1097_v46, %v1077_v1  ;;  %v1076_v16 = vadd.f32 %v1043_v8, %v952_v6  ;;  %v1201_v18 = vrot.slane %v1139_v9, 1  ;;  %v630_v19 = vrot.slane %v568_v45, 1 }
  0x3c   : > { %v692_v11 = vmul.f32 %v2092_v26, %v2149_v49  ;;  %v1325_v21 = vrot.slane %v1263_v14, 2  ;;  %v693_v13 = vmul.f32 %v2092_v26, %v2185_v17  ;;  %v811_v22 = vmul.f32 %v2108_v33, %v2119_v38 }
  0x3d   : > { %v1237_v20 = vadd.f32 %v1205_v5, %v1113_v10  ;;  %v1112_v23 = vadd.f32 %v1096_v4, %v1076_v16  ;;  %v1203_v27 = vsel %vm596_vm2, %v1201_v18, %v1202_v59  ;;  %v631_v28 = vsel %vm596_vm2, %v628_v15, %v630_v19 }
  0x3e   : > { %v753_v29 = vrot.slane %v692_v11, 2  ;;  %v1327_v31 = vsel %vm721_vm3, %v1325_v21, %v1326_v61  ;;  %v666_v32 = vadd.f32 %v631_v28, %v2168_v62  ;;  %v755_v35 = vrot.slane %v693_v13, 2 }
  0x3f   : > { %v1361_v30 = vadd.f32 %v1329_v12, %v1237_v20  ;;  %v1236_v36 = vadd.f32 %v1203_v27, %v1112_v23  ;;  %v853_v37 = vmul.f32 %v2111_v34, %v2119_v38  ;;  %v854_v45 = vmul.f32 %v2111_v34, %v2121_v39  ;;  %v2277_v23 = vld [vmem:[#allocation2 + $0x80] sm:$0xff] }
  0x40   : > { %v977_v46 = vmul.f32 %v2123_v40, %v2119_v38  ;;  %v756_v47 = vsel %vm721_vm3, %v753_v29, %v755_v35  ;;  %v978_v48 = vmul.f32 %v2123_v40, %v2121_v39  ;;  %v1137_v62 = vmul.f32 %v2129_v42, %v2161_v57 }
  0x41   : > { %1698 = vmatpush3.xpose.msk.msra.mxu0 %vm435_vm0, %v1361_v30  ;;  %v1360_v50 = vadd.f32 %v1327_v31, %v1236_v36  ;;  %v791_v51 = vadd.f32 %v756_v47, %v666_v32  ;;  %v913_v52 = vrot.slane %v853_v37, 1  ;;  %v915_v53 = vrot.slane %v854_v45, 1  ;;  %v2280_v32 = vld [vmem:[#allocation2 + $0x88] sm:$0x3] }
  0x42   : > { %1699 = vmatprep.subr.mxu0 %v1905_v0  ;;  %v1037_v55 = vrot.slane %v977_v46, 2  ;;  %v1039_v56 = vrot.slane %v978_v48, 2  ;;  %v1138_v59 = vmul.f32 %v2129_v42, %v2163_v58  ;;  %v1197_v60 = vrot.slane %v1137_v62, 1 }
  0x43   : > { %v827_v61 = vadd.f32 %v811_v22, %v791_v51  ;;  %v916_v63 = vsel %vm596_vm2, %v913_v52, %v915_v53  ;;  %v2251_v1 = vmul.f32 %v2131_v43, %v2161_v57  ;;  %v1262_v2 = vmul.f32 %v2131_v43, %v2163_v58 }
  0x44   : > { %v1040_v3 = vsel %vm721_vm3, %v1037_v55, %v1039_v56  ;;  %v1199_v4 = vrot.slane %v1138_v59, 1  ;;  %v566_v5 = vmul.f32 %v2090_v25, %v2244_v54  ;;  %v1095_v8 = vmul.f32 %v2126_v41, %v2161_v57 }
  0x45   : > { %1700 = vmatpush3.xpose.msk.msra.mxu0 %vm435_vm0, %v1360_v50  ;;  %v951_v6 = vadd.f32 %v916_v63, %v827_v61  ;;  %v524_v9 = vmul.f32 %v2087_v24, %v2244_v54  ;;  %v691_v58 = vmul.f32 %v2092_v26, %v2244_v54  ;;  %v1321_v10 = vrot.slane %v2251_v1, 2 }
  0x46   : > { %1701 = vmatprep.subr.mxu0 %v1905_v0  ;;  %v1323_v12 = vrot.slane %v1262_v2, 2  ;;  %v627_v14 = vrot.slane %v566_v5, 1  ;;  %v852_v16 = vmul.f32 %v2111_v34, %v2133_v44  ;;  %v1200_v19 = vsel %vm596_vm2, %v1197_v60, %v1199_v4 }
  0x47   : > { %v1075_v18 = vadd.f32 %v1040_v3, %v951_v6  ;;  %v752_v11 = vrot.slane %v691_v58, 2  ;;  %v976_v57 = vmul.f32 %v2123_v40, %v2133_v44  ;;  %v810_v21 = vmul.f32 %v2108_v33, %v2133_v44 }
  0x48   : > { %v629_v20 = vsel %vm596_vm2, %v627_v14, %v628_v15  ;;  %v912_v13 = vrot.slane %v852_v16, 1  ;;  %v1136_v22 = vmul.f32 %v2129_v42, %v2181_v7  ;;  %v1324_v35 = vsel %vm721_vm3, %v1321_v10, %v1323_v12 }
  0x49   : > { %v1111_v27 = vadd.f32 %v1095_v8, %v1075_v18  ;;  %v665_v28 = vadd.f32 %v629_v20, %v524_v9  ;;  %v754_v30 = vsel %vm721_vm3, %v752_v11, %v753_v29  ;;  %v1036_v31 = vrot.slane %v976_v57, 2 }
  0x4a   : > { %v1094_v15 = vmul.f32 %v2126_v41, %v2181_v7  ;;  %v1196_v36 = vrot.slane %v1136_v22, 1  ;;  %v1260_v37 = vmul.f32 %v2131_v43, %v2181_v7  ;;  %v914_v47 = vsel %vm596_vm2, %v912_v13, %v913_v52  ;;  %v2325_v22 = vld [vmem:[#allocation2 + $0x78] sm:$0xff] }
  0x4b   : > { %v1235_v45 = vadd.f32 %v1200_v19, %v1111_v27  ;;  %v790_v46 = vadd.f32 %v754_v30, %v665_v28  ;;  %v2290_v48 = vmul.f32 %v2090_v25, %v2277_v23  ;;  %v1038_v29 = vsel %vm721_vm3, %v1036_v31, %v1037_v55 }
  0x4c   : > { %v523_v62 = vmul.f32 %v2087_v24, %v2277_v23  ;;  %v565_v50 = vmul.f32 %v2090_v25, %v2280_v32  ;;  %v689_v51 = vmul.f32 %v2092_v26, %v2277_v23  ;;  %v690_v52 = vmul.f32 %v2092_v26, %v2280_v32 }
  0x4d   : > { %v1359_v7 = vadd.f32 %v1324_v35, %v1235_v45  ;;  %v826_v53 = vadd.f32 %v810_v21, %v790_v46  ;;  %v623_v56 = vrot.slane %v2290_v48, 1  ;;  %v1198_v59 = vsel %vm596_vm2, %v1196_v36, %v1197_v60 }
  0x4e   : > { %v1320_v61 = vrot.slane %v1260_v37, 2  ;;  %v625_v55 = vrot.slane %v565_v50, 1  ;;  %v748_v63 = vrot.slane %v689_v51, 2  ;;  %v750_v2 = vrot.slane %v690_v52, 2 }
  0x4f   : > { %1702 = vmatpush3.xpose.msk.msra.mxu0 %vm435_vm0, %v1359_v7  ;;  %v950_v1 = vadd.f32 %v914_v47, %v826_v53  ;;  %v850_v3 = vmul.f32 %v2111_v34, %v2149_v49  ;;  %v851_v4 = vmul.f32 %v2111_v34, %v2185_v17  ;;  %v809_v60 = vmul.f32 %v2108_v33, %v2149_v49 }
  0x50   : > { %1703 = vmatprep.subr.mxu0 %v1905_v0  ;;  %v626_v5 = vsel %vm596_vm2, %v623_v56, %v625_v55  ;;  %v974_v6 = vmul.f32 %v2123_v40, %v2149_v49  ;;  %v975_v8 = vmul.f32 %v2123_v40, %v2185_v17  ;;  %v751_v12 = vsel %vm721_vm3, %v748_v63, %v750_v2  ;;  %v2351_v55 = vld [vmem:[#allocation2 + $0x68] sm:$0xff] }
  0x51   : > { %v1074_v9 = vadd.f32 %v1038_v29, %v950_v1  ;;  %v664_v58 = vadd.f32 %v626_v5, %v523_v62  ;;  %v908_v14 = vrot.slane %v850_v3, 1  ;;  %v910_v16 = vrot.slane %v851_v4, 1 }
  0x52   : > { %v1032_v18 = vrot.slane %v974_v6, 2  ;;  %v1034_v19 = vrot.slane %v975_v8, 2  ;;  %v1134_v11 = vmul.f32 %v2129_v42, %v2119_v38  ;;  %v1135_v21 = vmul.f32 %v2129_v42, %v2121_v39 }
  0x53   : > { %v1110_v57 = vadd.f32 %v1094_v15, %v1074_v9  ;;  %v789_v20 = vadd.f32 %v751_v12, %v664_v58  ;;  %v2323_v13 = vmul.f32 %v2131_v43, %v2119_v38  ;;  %v1322_v27 = vsel %vm721_vm3, %v1320_v61, %v1321_v10  ;;  %v2358_v9 = vld [vmem:[#allocation2 + $0x70] sm:$0x3] }
  0x54   : > { %v911_v28 = vsel %vm596_vm2, %v908_v14, %v910_v16  ;;  %v1192_v30 = vrot.slane %v1134_v11, 1  ;;  %v1259_v31 = vmul.f32 %v2131_v43, %v2121_v39  ;;  %v1093_v36 = vmul.f32 %v2126_v41, %v2119_v38 }
  0x55   : > { %v1234_v35 = vadd.f32 %v1198_v59, %v1110_v57  ;;  %v825_v15 = vadd.f32 %v809_v60, %v789_v20  ;;  %v1194_v37 = vrot.slane %v1135_v21, 1  ;;  %v1035_v45 = vsel %vm721_vm3, %v1032_v18, %v1034_v19 }
  0x56   : > { %v1316_v46 = vrot.slane %v2323_v13, 2  ;;  %v563_v47 = vmul.f32 %v2090_v25, %v2325_v22  ;;  %v688_v10 = vmul.f32 %v2092_v26, %v2325_v22  ;;  %v1318_v62 = vrot.slane %v1259_v31, 2 }
  0x57   : > { %v1358_v48 = vadd.f32 %v1322_v27, %v1234_v35  ;;  %v949_v29 = vadd.f32 %v911_v28, %v825_v15  ;;  %v522_v39 = vmul.f32 %v2087_v24, %v2325_v22  ;;  %v1195_v50 = vsel %vm596_vm2, %v1192_v30, %v1194_v37 }
  0x58   : > { %v622_v38 = vrot.slane %v563_v47, 1  ;;  %v747_v51 = vrot.slane %v688_v10, 2  ;;  %v849_v7 = vmul.f32 %v2111_v34, %v2244_v54  ;;  %v808_v52 = vmul.f32 %v2108_v33, %v2244_v54 }
  0x59   : > { %1704 = vmatpush3.xpose.msk.msra.mxu0 %vm435_vm0, %v1358_v48  ;;  %v1073_v53 = vadd.f32 %v1035_v45, %v949_v29  ;;  %v973_v59 = vmul.f32 %v2123_v40, %v2244_v54  ;;  %v1133_v61 = vmul.f32 %v2129_v42, %v2133_v44  ;;  %v1257_v4 = vmul.f32 %v2131_v43, %v2133_v44 }
  0x5a   : > { %1705 = vmatprep.subr.mxu0 %v1905_v0  ;;  %v624_v1 = vsel %vm596_vm2, %v622_v38, %v623_v56  ;;  %v749_v2 = vsel %vm721_vm3, %v747_v51, %v748_v63  ;;  %v907_v3 = vrot.slane %v849_v7, 1  ;;  %v1319_v58 = vsel %vm721_vm3, %v1316_v46, %v1318_v62 }
  0x5b   : > { %v1109_v5 = vadd.f32 %v1093_v36, %v1073_v53  ;;  %v663_v60 = vadd.f32 %v624_v1, %v522_v39  ;;  %v1031_v6 = vrot.slane %v973_v59, 2  ;;  %v1191_v8 = vrot.slane %v1133_v61, 1 }
  0x5c   : > { %v909_v12 = vsel %vm596_vm2, %v907_v3, %v908_v14  ;;  %v1092_v16 = vmul.f32 %v2126_v41, %v2133_v44  ;;  %v2366_v56 = vmul.f32 %v2090_v25, %v2351_v55  ;;  %v1315_v11 = vrot.slane %v1257_v4, 2  ;;  %v2415_v3 = vld [vmem:[#allocation2 + $0x60] sm:$0xff] }
  0x5d   : > { %v1233_v63 = vadd.f32 %v1195_v50, %v1109_v5  ;;  %v788_v19 = vadd.f32 %v749_v2, %v663_v60  ;;  %v521_v57 = vmul.f32 %v2087_v24, %v2351_v55  ;;  %v1033_v20 = vsel %vm721_vm3, %v1031_v6, %v1032_v18 }
  0x5e   : > { %v562_v21 = vmul.f32 %v2090_v25, %v2358_v9  ;;  %v618_v14 = vrot.slane %v2366_v56, 1  ;;  %v2376_v44 = vmul.f32 %v2092_v26, %v2351_v55  ;;  %v1193_v28 = vsel %vm596_vm2, %v1191_v8, %v1192_v30 }
  0x5f   : > { %v1357_v13 = vadd.f32 %v1319_v58, %v1233_v63  ;;  %v824_v27 = vadd.f32 %v808_v52, %v788_v19  ;;  %v687_v31 = vmul.f32 %v2092_v26, %v2358_v9  ;;  %v2384_v18 = vmul.f32 %v2111_v34, %v2277_v23 }
  0x60   : > { %v620_v35 = vrot.slane %v562_v21, 1  ;;  %v743_v15 = vrot.slane %v2376_v44, 2  ;;  %v848_v36 = vmul.f32 %v2111_v34, %v2280_v32  ;;  %v2391_v30 = vmul.f32 %v2123_v40, %v2277_v23 }
  0x61   : > { %1706 = vmatpush3.xpose.msk.msra.mxu0 %vm435_vm0, %v1357_v13  ;;  %v948_v37 = vadd.f32 %v909_v12, %v824_v27  ;;  %v745_v45 = vrot.slane %v687_v31, 2  ;;  %v972_v47 = vmul.f32 %v2123_v40, %v2280_v32  ;;  %v1317_v10 = vsel %vm721_vm3, %v1315_v11, %v1316_v46 }
  0x62   : > { %1707 = vmatprep.subr.mxu0 %v1905_v0  ;;  %v621_v48 = vsel %vm596_vm2, %v618_v14, %v620_v35  ;;  %v903_v29 = vrot.slane %v2384_v18, 1  ;;  %v905_v62 = vrot.slane %v848_v36, 1  ;;  %v807_v51 = vmul.f32 %v2108_v33, %v2277_v23  ;;  %v2442_v36 = vld [vmem:[#allocation2 + $0x50] sm:$0xff] }
  0x63   : > { %v1072_v39 = vadd.f32 %v1033_v20, %v948_v37  ;;  %v662_v50 = vadd.f32 %v621_v48, %v521_v57  ;;  %v746_v38 = vsel %vm721_vm3, %v743_v15, %v745_v45  ;;  %v1027_v7 = vrot.slane %v2391_v30, 2  ;;  %v2444_v37 = vld [vmem:[#allocation2 + $0x58] sm:$0x3] }
  0x64   : > { %v1029_v53 = vrot.slane %v972_v47, 2  ;;  %v2405_v52 = vmul.f32 %v2129_v42, %v2149_v49  ;;  %v1132_v46 = vmul.f32 %v2129_v42, %v2185_v17  ;;  %v2411_v1 = vmul.f32 %v2131_v43, %v2149_v49 }
  0x65   : > { %v1108_v59 = vadd.f32 %v1092_v16, %v1072_v39  ;;  %v787_v61 = vadd.f32 %v746_v38, %v662_v50  ;;  %v1256_v2 = vmul.f32 %v2131_v43, %v2185_v17  ;;  %v906_v4 = vsel %vm596_vm2, %v903_v29, %v905_v62 }
  0x66   : > { %v1091_v5 = vmul.f32 %v2126_v41, %v2149_v49  ;;  %v1187_v60 = vrot.slane %v2405_v52, 1  ;;  %v1189_v6 = vrot.slane %v1132_v46, 1  ;;  %v1311_v12 = vrot.slane %v2411_v1, 2 }
  0x67   : > { %v1232_v8 = vadd.f32 %v1193_v28, %v1108_v59  ;;  %v823_v58 = vadd.f32 %v807_v51, %v787_v61  ;;  %v1313_v16 = vrot.slane %v1256_v2, 2  ;;  %v1030_v56 = vsel %vm721_vm3, %v1027_v7, %v1029_v53 }
  0x68   : > { %v520_v17 = vmul.f32 %v2087_v24, %v2415_v3  ;;  %v560_v63 = vmul.f32 %v2090_v25, %v2415_v3  ;;  %v685_v19 = vmul.f32 %v2092_v26, %v2415_v3  ;;  %v1190_v57 = vsel %vm596_vm2, %v1187_v60, %v1189_v6 }
  0x69   : > { %v1356_v49 = vadd.f32 %v1317_v10, %v1232_v8  ;;  %v947_v11 = vadd.f32 %v906_v4, %v823_v58  ;;  %v846_v20 = vmul.f32 %v2111_v34, %v2325_v22  ;;  %v806_v13 = vmul.f32 %v2108_v33, %v2325_v22 }
  0x6a   : > { %v617_v21 = vrot.slane %v560_v63, 1  ;;  %v742_v44 = vrot.slane %v685_v19, 2  ;;  %v970_v27 = vmul.f32 %v2123_v40, %v2325_v22  ;;  %v1314_v31 = vsel %vm721_vm3, %v1311_v12, %v1313_v16 }
  0x6b   : > { %1708 = vmatpush3.xpose.msk.msra.mxu0 %vm435_vm0, %v1356_v49  ;;  %v1071_v28 = vadd.f32 %v1030_v56, %v947_v11  ;;  %v902_v35 = vrot.slane %v846_v20, 1  ;;  %v1130_v18 = vmul.f32 %v2129_v42, %v2244_v54  ;;  %v1254_v10 = vmul.f32 %v2131_v43, %v2244_v54 }
  0x6c   : > { %1709 = vmatprep.subr.mxu0 %v1905_v0  ;;  %v619_v45 = vsel %vm596_vm2, %v617_v21, %v618_v14  ;;  %v744_v30 = vsel %vm721_vm3, %v742_v44, %v743_v15  ;;  %v1026_v47 = vrot.slane %v970_v27, 2  ;;  %v1090_v39 = vmul.f32 %v2126_v41, %v2244_v54 }
  0x6d   : > { %v1107_v48 = vadd.f32 %v1091_v5, %v1071_v28  ;;  %v661_v62 = vadd.f32 %v619_v45, %v520_v17  ;;  %v519_v50 = vmul.f32 %v2087_v24, %v2442_v36  ;;  %v904_v38 = vsel %vm596_vm2, %v902_v35, %v903_v29  ;;  %v2500_v45 = vld [vmem:[#allocation2 + $0x48] sm:$0xff] }
  0x6e   : > { %v1186_v51 = vrot.slane %v1130_v18, 1  ;;  %v2458_v14 = vmul.f32 %v2090_v25, %v2442_v36  ;;  %v559_v15 = vmul.f32 %v2090_v25, %v2444_v37  ;;  %v1028_v46 = vsel %vm721_vm3, %v1026_v47, %v1027_v7 }
  0x6f   : > { %v1231_v53 = vadd.f32 %v1190_v57, %v1107_v48  ;;  %v786_v52 = vadd.f32 %v744_v30, %v661_v62  ;;  %v2465_v54 = vmul.f32 %v2092_v26, %v2442_v36  ;;  %v1310_v59 = vrot.slane %v1254_v10, 2 }
  0x70   : > { %v613_v61 = vrot.slane %v2458_v14, 1  ;;  %v615_v29 = vrot.slane %v559_v15, 1  ;;  %v684_v2 = vmul.f32 %v2092_v26, %v2444_v37  ;;  %v805_v8 = vmul.f32 %v2108_v33, %v2351_v55 }
  0x71   : > { %v1355_v4 = vadd.f32 %v1314_v31, %v1231_v53  ;;  %v822_v5 = vadd.f32 %v806_v13, %v786_v52  ;;  %v738_v6 = vrot.slane %v2465_v54, 2  ;;  %v844_v16 = vmul.f32 %v2111_v34, %v2351_v55 }
  0x72   : > { %v616_v7 = vsel %vm596_vm2, %v613_v61, %v615_v29  ;;  %v740_v58 = vrot.slane %v684_v2, 2  ;;  %v845_v56 = vmul.f32 %v2111_v34, %v2358_v9  ;;  %v2481_v19 = vmul.f32 %v2123_v40, %v2351_v55 }
  0x73   : > { %1710 = vmatpush3.xpose.msk.msra.mxu0 %vm435_vm0, %v1355_v4  ;;  %v946_v17 = vadd.f32 %v904_v38, %v822_v5  ;;  %v660_v63 = vadd.f32 %v616_v7, %v519_v50  ;;  %v969_v49 = vmul.f32 %v2123_v40, %v2358_v9  ;;  %v1188_v11 = vsel %vm596_vm2, %v1186_v51, %v1187_v60 }
  0x74   : > { %1711 = vmatprep.subr.mxu0 %v1905_v0  ;;  %v741_v57 = vsel %vm721_vm3, %v738_v6, %v740_v58  ;;  %v898_v20 = vrot.slane %v844_v16, 1  ;;  %v900_v21 = vrot.slane %v845_v56, 1  ;;  %v1022_v27 = vrot.slane %v2481_v19, 2  ;;  %v2531_v56 = vld [vmem:[#allocation2 + $0x38] sm:$0xff] }
  0x75   : > { %v1070_v44 = vadd.f32 %v1028_v46, %v946_v17  ;;  %v785_v13 = vadd.f32 %v741_v57, %v660_v63  ;;  %v1024_v28 = vrot.slane %v969_v49, 2  ;;  %v2492_v35 = vmul.f32 %v2129_v42, %v2277_v23  ;;  %v2533_v17 = vld [vmem:[#allocation2 + $0x40] sm:$0x3] }
  0x76   : > { %v901_v31 = vsel %vm596_vm2, %v898_v20, %v900_v21  ;;  %v1129_v18 = vmul.f32 %v2129_v42, %v2280_v32  ;;  %v2498_v60 = vmul.f32 %v2131_v43, %v2277_v23  ;;  %v1312_v47 = vsel %vm721_vm3, %v1310_v59, %v1311_v12 }
  0x77   : > { %v1106_v30 = vadd.f32 %v1090_v39, %v1070_v44  ;;  %v821_v10 = vadd.f32 %v805_v8, %v785_v13  ;;  %v1253_v48 = vmul.f32 %v2131_v43, %v2280_v32  ;;  %v1025_v62 = vsel %vm721_vm3, %v1022_v27, %v1024_v28 }
  0x78   : > { %v1089_v50 = vmul.f32 %v2126_v41, %v2277_v23  ;;  %v1182_v38 = vrot.slane %v2492_v35, 1  ;;  %v1184_v51 = vrot.slane %v1129_v18, 1  ;;  %v1306_v39 = vrot.slane %v2498_v60, 2 }
  0x79   : > { %v1230_v14 = vadd.f32 %v1188_v11, %v1106_v30  ;;  %v945_v15 = vadd.f32 %v901_v31, %v821_v10  ;;  %v557_v1 = vmul.f32 %v2090_v25, %v2500_v45  ;;  %v1308_v12 = vrot.slane %v1253_v48, 2 }
  0x7a   : > { %v518_v53 = vmul.f32 %v2087_v24, %v2500_v45  ;;  %v682_v32 = vmul.f32 %v2092_v26, %v2500_v45  ;;  %v843_v23 = vmul.f32 %v2111_v34, %v2415_v3  ;;  %v1185_v54 = vsel %vm596_vm2, %v1182_v38, %v1184_v51 }
  0x7b   : > { %v1354_v52 = vadd.f32 %v1312_v47, %v1230_v14  ;;  %v1069_v46 = vadd.f32 %v1025_v62, %v945_v15  ;;  %v612_v59 = vrot.slane %v557_v1, 1  ;;  %v804_v2 = vmul.f32 %v2108_v33, %v2415_v3 }
  0x7c   : > { %v737_v29 = vrot.slane %v682_v32, 2  ;;  %v897_v4 = vrot.slane %v843_v23, 1  ;;  %v967_v5 = vmul.f32 %v2123_v40, %v2415_v3  ;;  %v1127_v58 = vmul.f32 %v2129_v42, %v2325_v22 }
  0x7d   : > { %1712 = vmatpush3.xpose.msk.msra.mxu0 %vm435_vm0, %v1354_v52  ;;  %v1105_v8 = vadd.f32 %v1089_v50, %v1069_v46  ;;  %v614_v7 = vsel %vm596_vm2, %v612_v59, %v613_v61  ;;  %v1251_v16 = vmul.f32 %v2131_v43, %v2325_v22  ;;  %v1309_v63 = vsel %vm721_vm3, %v1306_v39, %v1308_v12 }
  0x7e   : > { %1713 = vmatprep.subr.mxu0 %v1905_v0  ;;  %v659_v19 = vadd.f32 %v614_v7, %v518_v53  ;;  %v739_v49 = vsel %vm721_vm3, %v737_v29, %v738_v6  ;;  %v1021_v61 = vrot.slane %v967_v5, 2  ;;  %v899_v57 = vsel %vm596_vm2, %v897_v4, %v898_v20 }
  0x7f   : > { %v1229_v11 = vadd.f32 %v1185_v54, %v1105_v8  ;;  %v1088_v21 = vmul.f32 %v2126_v41, %v2325_v22  ;;  %v1181_v44 = vrot.slane %v1127_v58, 1  ;;  %v1305_v28 = vrot.slane %v1251_v16, 2 }
  0x80   : > { %v784_v13 = vadd.f32 %v739_v49, %v659_v19  ;;  %v2545_v31 = vmul.f32 %v2090_v25, %v2531_v56  ;;  %v556_v35 = vmul.f32 %v2090_v25, %v2533_v17  ;;  %v1023_v6 = vsel %vm721_vm3, %v1021_v61, %v1022_v27 }
  0x81   : > { %v1353_v18 = vadd.f32 %v1309_v63, %v1229_v11  ;;  %v517_v30 = vmul.f32 %v2087_v24, %v2531_v56  ;;  %v2554_v20 = vmul.f32 %v2092_v26, %v2531_v56  ;;  %v681_v48 = vmul.f32 %v2092_v26, %v2533_v17  ;;  %v2588_v63 = vld [vmem:[#allocation2 + $0x30] sm:$0xff] }
  0x82   : > { %v820_v22 = vadd.f32 %v804_v2, %v784_v13  ;;  %v608_v47 = vrot.slane %v2545_v31, 1  ;;  %v610_v10 = vrot.slane %v556_v35, 1  ;;  %v803_v27 = vmul.f32 %v2108_v33, %v2442_v36 }
  0x83   : > { %1714 = vmatpush3.xpose.msk.msra.mxu0 %vm435_vm0, %v1353_v18  ;;  %v733_v62 = vrot.slane %v2554_v20, 2  ;;  %v841_v50 = vmul.f32 %v2111_v34, %v2442_v36  ;;  %v842_v51 = vmul.f32 %v2111_v34, %v2444_v37  ;;  %v735_v1 = vrot.slane %v681_v48, 2 }
  0x84   : > { %1715 = vmatprep.subr.mxu0 %v1905_v0  ;;  %v944_v14 = vadd.f32 %v899_v57, %v820_v22  ;;  %v611_v15 = vsel %vm596_vm2, %v608_v47, %v610_v10  ;;  %v965_v12 = vmul.f32 %v2123_v40, %v2442_v36  ;;  %v966_v52 = vmul.f32 %v2123_v40, %v2444_v37 }
  0x85   : > { %v658_v53 = vadd.f32 %v611_v15, %v517_v30  ;;  %v893_v32 = vrot.slane %v841_v50, 1  ;;  %v895_v23 = vrot.slane %v842_v51, 1  ;;  %v1183_v54 = vsel %vm596_vm2, %v1181_v44, %v1182_v38  ;;  %v2618_v51 = vld [vmem:[#allocation2 + $0x20] sm:$0xff] }
  0x86   : > { %v1068_v46 = vadd.f32 %v1023_v6, %v944_v14  ;;  %v736_v59 = vsel %vm721_vm3, %v733_v62, %v735_v1  ;;  %v1017_v29 = vrot.slane %v965_v12, 2  ;;  %v1019_v5 = vrot.slane %v966_v52, 2 }
  0x87   : > { %v783_v2 = vadd.f32 %v736_v59, %v658_v53  ;;  %v896_v4 = vsel %vm596_vm2, %v893_v32, %v895_v23  ;;  %v2578_v8 = vmul.f32 %v2129_v42, %v2351_v55  ;;  %v1126_v58 = vmul.f32 %v2129_v42, %v2358_v9  ;;  %v2623_v53 = vld [vmem:[#allocation2 + $0x28] sm:$0x3] }
  0x88   : > { %v1104_v7 = vadd.f32 %v1088_v21, %v1068_v46  ;;  %v2584_v16 = vmul.f32 %v2131_v43, %v2351_v55  ;;  %v1250_v38 = vmul.f32 %v2131_v43, %v2358_v9  ;;  %v1307_v19 = vsel %vm721_vm3, %v1305_v28, %v1306_v39 }
  0x89   : > { %v819_v49 = vadd.f32 %v803_v27, %v783_v2  ;;  %v1020_v61 = vsel %vm721_vm3, %v1017_v29, %v1019_v5  ;;  %v1087_v11 = vmul.f32 %v2126_v41, %v2351_v55  ;;  %v1177_v21 = vrot.slane %v2578_v8, 1 }
  0x8a   : > { %v1228_v57 = vadd.f32 %v1183_v54, %v1104_v7  ;;  %v1179_v44 = vrot.slane %v1126_v58, 1  ;;  %v516_v13 = vmul.f32 %v2087_v24, %v2588_v63  ;;  %v1301_v31 = vrot.slane %v2584_v16, 2 }
  0x8b   : > { %v943_v9 = vadd.f32 %v896_v4, %v819_v49  ;;  %v554_v60 = vmul.f32 %v2090_v25, %v2588_v63  ;;  %v679_v39 = vmul.f32 %v2092_v26, %v2588_v63  ;;  %v1303_v35 = vrot.slane %v1250_v38, 2 }
  0x8c   : > { %v1352_v28 = vadd.f32 %v1307_v19, %v1228_v57  ;;  %v802_v55 = vmul.f32 %v2108_v33, %v2500_v45  ;;  %v840_v18 = vmul.f32 %v2111_v34, %v2500_v45  ;;  %v964_v22 = vmul.f32 %v2123_v40, %v2500_v45 }
  0x8d   : > { %v1067_v6 = vadd.f32 %v1020_v61, %v943_v9  ;;  %v607_v30 = vrot.slane %v554_v60, 1  ;;  %v732_v20 = vrot.slane %v679_v39, 2  ;;  %v1180_v10 = vsel %vm596_vm2, %v1177_v21, %v1179_v44 }
  0x8e   : > { %1716 = vmatpush3.xpose.msk.msra.mxu0 %vm435_vm0, %v1352_v28  ;;  %v892_v48 = vrot.slane %v840_v18, 1  ;;  %v1124_v27 = vmul.f32 %v2129_v42, %v2415_v3  ;;  %v1248_v50 = vmul.f32 %v2131_v43, %v2415_v3  ;;  %v1016_v12 = vrot.slane %v964_v22, 2 }
  0x8f   : > { %1717 = vmatprep.subr.mxu0 %v1905_v0  ;;  %v1103_v14 = vadd.f32 %v1087_v11, %v1067_v6  ;;  %v609_v15 = vsel %vm596_vm2, %v607_v30, %v608_v47  ;;  %v734_v1 = vsel %vm721_vm3, %v732_v20, %v733_v62  ;;  %v1304_v23 = vsel %vm721_vm3, %v1301_v31, %v1303_v35 }
  0x90   : > { %v657_v52 = vadd.f32 %v609_v15, %v516_v13  ;;  %v894_v46 = vsel %vm596_vm2, %v892_v48, %v893_v32  ;;  %v1086_v54 = vmul.f32 %v2126_v41, %v2415_v3  ;;  %v1176_v2 = vrot.slane %v1124_v27, 1  ;;  %v2674_v15 = vld [vmem:[#allocation2 + $0x18] sm:$0xff] }
  0x91   : > { %v1227_v59 = vadd.f32 %v1180_v10, %v1103_v14  ;;  %v1300_v4 = vrot.slane %v1248_v50, 2  ;;  %v2631_v5 = vmul.f32 %v2090_v25, %v2618_v51  ;;  %v1018_v62 = vsel %vm721_vm3, %v1016_v12, %v1017_v29 }
  0x92   : > { %v782_v47 = vadd.f32 %v734_v1, %v657_v52  ;;  %v515_v7 = vmul.f32 %v2087_v24, %v2618_v51  ;;  %v553_v58 = vmul.f32 %v2090_v25, %v2623_v53  ;;  %v677_v3 = vmul.f32 %v2092_v26, %v2618_v51 }
  0x93   : > { %v1351_v32 = vadd.f32 %v1304_v23, %v1227_v59  ;;  %v603_v16 = vrot.slane %v2631_v5, 1  ;;  %v678_v38 = vmul.f32 %v2092_v26, %v2623_v53  ;;  %v801_v29 = vmul.f32 %v2108_v33, %v2531_v56 }
  0x94   : > { %v818_v19 = vadd.f32 %v802_v55, %v782_v47  ;;  %v605_v49 = vrot.slane %v553_v58, 1  ;;  %v838_v61 = vmul.f32 %v2111_v34, %v2531_v56  ;;  %v728_v11 = vrot.slane %v677_v3, 2 }
  0x95   : > { %1718 = vmatpush3.xpose.msk.msra.mxu0 %vm435_vm0, %v1351_v32  ;;  %v730_v57 = vrot.slane %v678_v38, 2  ;;  %v839_v44 = vmul.f32 %v2111_v34, %v2533_v17  ;;  %v2652_v13 = vmul.f32 %v2123_v40, %v2531_v56  ;;  %v963_v28 = vmul.f32 %v2123_v40, %v2533_v17 }
  0x96   : > { %1719 = vmatprep.subr.mxu0 %v1905_v0  ;;  %v942_v9 = vadd.f32 %v894_v46, %v818_v19  ;;  %v606_v60 = vsel %vm596_vm2, %v603_v16, %v605_v49  ;;  %v888_v39 = vrot.slane %v838_v61, 1  ;;  %v1178_v20 = vsel %vm596_vm2, %v1176_v2, %v1177_v21 }
  0x97   : > { %v656_v35 = vadd.f32 %v606_v60, %v515_v7  ;;  %v731_v55 = vsel %vm721_vm3, %v728_v11, %v730_v57  ;;  %v890_v18 = vrot.slane %v839_v44, 1  ;;  %v1012_v6 = vrot.slane %v2652_v13, 2 }
  0x98   : > { %v1066_v30 = vadd.f32 %v1018_v62, %v942_v9  ;;  %v1014_v22 = vrot.slane %v963_v28, 2  ;;  %v2665_v10 = vmul.f32 %v2129_v42, %v2442_v36  ;;  %v1302_v48 = vsel %vm721_vm3, %v1300_v4, %v1301_v31  ;;  %v477_v9 = vld [vmem:[#allocation2 + $0x10] sm:$0x3] }
  0x99   : > { %v781_v27 = vadd.f32 %v731_v55, %v656_v35  ;;  %v1123_v50 = vmul.f32 %v2129_v42, %v2444_v37  ;;  %v2672_v14 = vmul.f32 %v2131_v43, %v2442_v36  ;;  %v891_v21 = vsel %vm596_vm2, %v888_v39, %v890_v18 }
  0x9a   : > { %v1102_v8 = vadd.f32 %v1086_v54, %v1066_v30  ;;  %v1172_v1 = vrot.slane %v2665_v10, 1  ;;  %v1247_v12 = vmul.f32 %v2131_v43, %v2444_v37  ;;  %v1015_v31 = vsel %vm721_vm3, %v1012_v6, %v1014_v22 }
  0x9b   : > { %v817_v23 = vadd.f32 %v801_v29, %v781_v27  ;;  %v1085_v52 = vmul.f32 %v2126_v41, %v2442_v36  ;;  %v1174_v46 = vrot.slane %v1123_v50, 1  ;;  %v1296_v2 = vrot.slane %v2672_v14, 2  ;;  %v476_v29 = vld [vmem:[#allocation2 + $0x8] sm:$0xff] }
  0x9c   : > { %v1226_v59 = vadd.f32 %v1178_v20, %v1102_v8  ;;  %v551_v54 = vmul.f32 %v2090_v25, %v2674_v15  ;;  %v676_v4 = vmul.f32 %v2092_v26, %v2674_v15  ;;  %v1298_v47 = vrot.slane %v1247_v12, 2 }
  0x9d   : > { %v941_v5 = vadd.f32 %v891_v21, %v817_v23  ;;  %v514_v37 = vmul.f32 %v2087_v24, %v2674_v15  ;;  %v837_v62 = vmul.f32 %v2111_v34, %v2588_v63  ;;  %v1175_v36 = vsel %vm596_vm2, %v1172_v1, %v1174_v46 }
  0x9e   : > { %v1350_v7 = vadd.f32 %v1302_v48, %v1226_v59  ;;  %v602_v58 = vrot.slane %v551_v54, 1  ;;  %v727_v32 = vrot.slane %v676_v4, 2  ;;  %v800_v38 = vmul.f32 %v2108_v33, %v2588_v63 }
  0x9f   : > { %v1065_v3 = vadd.f32 %v1015_v31, %v941_v5  ;;  %v887_v19 = vrot.slane %v837_v62, 1  ;;  %v961_v49 = vmul.f32 %v2123_v40, %v2588_v63  ;;  %v1121_v44 = vmul.f32 %v2129_v42, %v2500_v45 }
  0xa0   : > { %1720 = vmatpush3.xpose.msk.msra.mxu0 %vm435_vm0, %v1350_v7  ;;  %v604_v61 = vsel %vm596_vm2, %v602_v58, %v603_v16  ;;  %v729_v57 = vsel %vm721_vm3, %v727_v32, %v728_v11  ;;  %v1245_v13 = vmul.f32 %v2131_v43, %v2500_v45  ;;  %v1299_v28 = vsel %vm721_vm3, %v1296_v2, %v1298_v47 }
  0xa1   : > { %1721 = vmatprep.subr.mxu0 %v1905_v0  ;;  %v1101_v60 = vadd.f32 %v1085_v52, %v1065_v3  ;;  %v655_v35 = vadd.f32 %v604_v61, %v514_v37  ;;  %v1011_v55 = vrot.slane %v961_v49, 2  ;;  %v889_v16 = vsel %vm596_vm2, %v887_v19, %v888_v39 }
  0xa2   : > { %v1084_v11 = vmul.f32 %v2126_v41, %v2500_v45  ;;  %v1171_v18 = vrot.slane %v1121_v44, 1  ;;  %v2714_v30 = vmul.f32 %v2090_v25, %v476_v29  ;;  %v1295_v48 = vrot.slane %v1245_v13, 2 }
  0xa3   : > { %v1225_v20 = vadd.f32 %v1175_v36, %v1101_v60  ;;  %v780_v22 = vadd.f32 %v729_v57, %v655_v35  ;;  %v550_v27 = vmul.f32 %v2090_v25, %v477_v9  ;;  %v1013_v50 = vsel %vm721_vm3, %v1011_v55, %v1012_v6  ;;  %v475_v57 = vld [vmem:[#allocation2] sm:$0xff] }
  0xa4   : > { %v513_v8 = vmul.f32 %v2087_v24, %v476_v29  ;;  %v598_v21 = vrot.slane %v2714_v30, 1  ;;  %v674_v39 = vmul.f32 %v2092_v26, %v476_v29  ;;  %v675_v31 = vmul.f32 %v2092_v26, %v477_v9 }
  0xa5   : > { %v1349_v12 = vadd.f32 %v1299_v28, %v1225_v20  ;;  %v816_v23 = vadd.f32 %v800_v38, %v780_v22  ;;  %v600_v45 = vrot.slane %v550_v27, 1  ;;  %v799_v46 = vmul.f32 %v2108_v33, %v2618_v51 }
  0xa6   : > { %v723_v52 = vrot.slane %v674_v39, 2  ;;  %v2726_v59 = vmul.f32 %v2111_v34, %v2618_v51  ;;  %v836_v6 = vmul.f32 %v2111_v34, %v2623_v53  ;;  %v725_v5 = vrot.slane %v675_v31, 2 }
  0xa7   : > { %1722 = vmatpush3.xpose.msk.msra.mxu0 %vm435_vm0, %v1349_v12  ;;  %v940_v54 = vadd.f32 %v889_v16, %v816_v23  ;;  %v601_v4 = vsel %vm596_vm2, %v598_v21, %v600_v45  ;;  %v2734_v47 = vmul.f32 %v2123_v40, %v2618_v51  ;;  %v960_v36 = vmul.f32 %v2123_v40, %v2623_v53  ;;  %v1363_v23 = vld [vmem:[%s2853_s5] sm:$0xff] }
  0xa8   : > { %1723 = vmatprep.subr.mxu0 %v1905_v0  ;;  %v654_v37 = vadd.f32 %v601_v4, %v513_v8  ;;  %v883_v62 = vrot.slane %v2726_v59, 1  ;;  %v885_v7 = vrot.slane %v836_v6, 1  ;;  %v1173_v32 = vsel %vm596_vm2, %v1171_v18, %v1172_v1 }
  0xa9   : > { %v1064_v58 = vadd.f32 %v1013_v50, %v940_v54  ;;  %v726_v3 = vsel %vm721_vm3, %v723_v52, %v725_v5  ;;  %v1007_v38 = vrot.slane %v2734_v47, 2  ;;  %v1009_v49 = vrot.slane %v960_v36, 2 }
  0xaa   : > { %v779_v51 = vadd.f32 %v726_v3, %v654_v37  ;;  %v886_v19 = vsel %vm596_vm2, %v883_v62, %v885_v7  ;;  %v1119_v29 = vmul.f32 %v2129_v42, %v2531_v56  ;;  %v1120_v53 = vmul.f32 %v2129_v42, %v2533_v17 }
  0xab   : > { %v1100_v61 = vadd.f32 %v1084_v11, %v1064_v58  ;;  %v1243_v10 = vmul.f32 %v2131_v43, %v2531_v56  ;;  %v1244_v1 = vmul.f32 %v2131_v43, %v2533_v17  ;;  %v1297_v44 = vsel %vm721_vm3, %v1295_v48, %v1296_v2 }
  0xac   : > { %v815_v13 = vadd.f32 %v799_v46, %v779_v51  ;;  %v1083_v9 = vmul.f32 %v2126_v41, %v2531_v56  ;;  %v1010_v28 = vsel %vm721_vm3, %v1007_v38, %v1009_v49  ;;  %v1167_v35 = vrot.slane %v1119_v29, 1 }
  0xad   : > { %v1224_v60 = vadd.f32 %v1173_v32, %v1100_v61  ;;  %v1169_v55 = vrot.slane %v1120_v53, 1  ;;  %v512_v11 = vmul.f32 %v2087_v24, %v475_v57  ;;  %v548_v18 = vmul.f32 %v2090_v25, %v475_v57 }
  0xae   : > { %v939_v16 = vadd.f32 %v886_v19, %v815_v13  ;;  %v673_v17 = vmul.f32 %v2092_v26, %v475_v57  ;;  %v1291_v14 = vrot.slane %v1243_v10, 2  ;;  %v1293_v20 = vrot.slane %v1244_v1, 2 }
  0xaf   : > { %v1348_v30 = vadd.f32 %v1297_v44, %v1224_v60  ;;  %v834_v2 = vmul.f32 %v2111_v34, %v2674_v15  ;;  %v597_v56 = vrot.slane %v548_v18, 1  ;;  %v958_v27 = vmul.f32 %v2123_v40, %v2674_v15 }
  0xb0   : > { %v1063_v22 = vadd.f32 %v1010_v28, %v939_v16  ;;  %v722_v48 = vrot.slane %v673_v17, 2  ;;  %v1170_v24 = vsel %vm596_vm2, %v1167_v35, %v1169_v55  ;;  %v1294_v34 = vsel %vm721_vm3, %v1291_v14, %v1293_v20 }
  0xb1   : > { %1724 = vmatpush3.xpose.msk.msra.mxu0 %vm435_vm0, %v1348_v30  ;;  %v599_v26 = vsel %vm596_vm2, %v597_v56, %v598_v21  ;;  %v882_v8 = vrot.slane %v834_v2, 1  ;;  %v798_v12 = vmul.f32 %v2108_v33, %v2674_v15  ;;  %v1118_v40 = vmul.f32 %v2129_v42, %v2588_v63 }
  0xb2   : > { %1725 = vmatprep.subr.mxu0 %v1905_v0  ;;  %v1099_v25 = vadd.f32 %v1083_v9, %v1063_v22  ;;  %v724_v50 = vsel %vm721_vm3, %v722_v48, %v723_v52  ;;  %v653_v39 = vadd.f32 %v599_v26, %v512_v11  ;;  %v1006_v31 = vrot.slane %v958_v27, 2 }
  0xb3   : > { %v1907_v21 = vmov 0   ;;  %v884_v59 = vsel %vm596_vm2, %v882_v8, %v883_v62  ;;  %v1242_v33 = vmul.f32 %v2131_v43, %v2588_v63  ;;  %v1166_v6 = vrot.slane %v1118_v40, 1 }
  0xb4   : > { %v1223_v45 = vadd.f32 %v1170_v24, %v1099_v25  ;;  %v778_v46 = vadd.f32 %v724_v50, %v653_v39  ;;  %1810 = vset.pattern.permute.xlu0 %v1907_v21  ;;  %v1008_v15 = vsel %vm721_vm3, %v1006_v31, %v1007_v38  ;;  %v1082_v4 = vmul.f32 %v2126_v41, %v2588_v63 }
  0xb5   : > { %1366 = vperm.xlu0 %1810, %v1363_v23   ;;  %v1290_v5 = vrot.slane %v1242_v33, 2  ;;  %v1168_v43 = vsel %vm596_vm2, %v1166_v6, %v1167_v35 }
  0xb6   : > { %v1347_v52 = vadd.f32 %v1294_v34, %v1223_v45  ;;  %v814_v42 = vadd.f32 %v798_v12, %v778_v46 }
  0xb7   : > { %v1292_v62 = vsel %vm721_vm3, %v1290_v5, %v1291_v14 }
  0xb8   : > { %1726 = vmatpush3.xpose.msk.msra.mxu0 %vm435_vm0, %v1347_v52  ;;  %v938_v54 = vadd.f32 %v884_v59, %v814_v42 }
  0xb9   : > { %1727 = vmatprep.subr.mxu0 %v1905_v0  ;;  %v1362_v0 = vld [vmem:[%s2852_s4] sm:$0xff] }
  0xba   : > { %v1062_v47 = vadd.f32 %v1008_v15, %v938_v54 }
  0xbc   : > { %v1098_v37 = vadd.f32 %v1082_v4, %v1062_v47 }
  0xbe   : > { %v1222_v7 = vadd.f32 %v1168_v43, %v1098_v37 }
  0xc0   : > { %v1346_v36 = vadd.f32 %v1292_v62, %v1222_v7 }
  0xc2   : > { %1728 = vmatpush3.xpose.msk.msra.mxu0 %vm435_vm0, %v1346_v36 }
  0xc5   : > { %1730 = vmatmul.mubr.msk.f32.vlgmr.msra.gmra.mxu0 %vm435_vm0, %v1362_v0 }
 0x130   : > { %v1367_v41 = vpop.permute.xlu0 %1366 }
 0x185   : > { %v1486_v63 = vpop.f32.mrf.mxu0 }
 0x186   : > { %v1487_v58 = vadd.f32 %v1486_v63, %v1367_v41 }
 0x187   : > { %v1731_v32 = vpop.f32.mrf.mxu0 }
 0x188   : > { %1490 = vst [vmem:[%s361_s16] sm:$0xff] %v1487_v58 }
 0x189   : > { %1824 = shalt.err (!%p1821_p10)
}
 0x18a   : > { %s1825_s18 = scalar_lea.hbm %s2802_s7, 128  ;;  %s1829_s17 = scalar_lea.hbm %s2854_s6, 512 }
 0x18b   : > { %p1826_p11 = scmp.ne.s32.totalorder %s2802_s7, %s1825_s18  ;;  %p1830_p0 = scmp.lt.s32.totalorder %s2802_s7, %s2854_s6 }
 0x18c   : > { %p1831_p1 = scmp.lt.s32.totalorder %s1829_s17, %s1825_s18 }
 0x18d   : > { %p1827_p12 = pnand %p1826_p11, %p1995_p3 }
 0x18e   : > { %p1832_p2 = por %p1831_p1, %p1830_p0 }
 0x18f   : > { %p1828_p13 = pneg %p1827_p12 }
 0x191   : > { %p1833_p4 = pnand %p1832_p2, %p1828_p13 }
 0x193   : > { %1836 = shalt.err (!%p1833_p4)
}
 0x194   : > { %1736 = dma.vmem_to_hbm [thread:$0]  (%p1995_p3), %s1508_s19, 128, %s2802_s7, %s1492_s12  }
 0x195 PF: > { %p1742_p5 = scmp.ge.s32.totalorder %s1903_s28, 2  ;;  %s1519_s8 = sand.u32 1, %s1875_s21  }
 0x196   : > { %s1520_s9 = scalar_lea.sflag [#allocation4], %s1519_s8 }
 0x197   : > { %p1739_p6 = pnand %p1742_p5, %p2004_p8 }
 0x199   : > { %p1740_p7 = pneg %p1739_p6 }
 0x19b   : > { %1870 = dma.done.wait (%p1740_p7), %s1520_s9, 128  }
 0x19c   : > { %1872 = vsyncadd (%p1740_p7), %s1520_s9, 4294967168  ;;  %s19_s28 = sadd.s32 1, %s1903_s28   ;;  %s2862_s10 = sld [smem:[#allocation6_spill]] }
 0x19d   : > { %p16_p9 = scmp.ge.s32.totalorder %s19_s28, 6   ;;  %s2863_s19 = sld [smem:[#allocation7_spill]] }
 0x19e   : > { %s2864_s21 = smov %s1879_s22  ;;  %s2865_s22 = smov %s1883_s23 }
 0x19f   : > { %s2866_s23 = smov %s2013_s15  ;;  %s2867_s24 = smov %s1895_s26 }
 0x1a0   : > { %s2868_s25 = smov %s1899_s27  ;;  %18 = sbr.rel (!%p16_p9) target bundleno = 5 (0x5), region = 87 }
 0x1a2   : > { %s2869_s26 = smov %s2862_s10 }
 0x1a3   : > { %s2870_s27 = smov %s2863_s19 }
 0x1a5   :  { %1525 = vsyncpa [#allocation4], 1 }
 0x1a6   :  { %1527 = vsyncpa [#allocation4 + $0x1], 1 }

</bundles_post_ra>
